<compile_context>
chip_gen: v5e
topology: v5e:2x2
jax: 0.10.0
libtpu: 0.0.40
codegen_flags: <defaults>
</compile_context>

<pallas_src>
import functools

import jax
import jax.numpy as jnp
import numpy as np
from jax.experimental import pallas as pl
from jax.experimental.pallas import tpu as pltpu

EPS = 1e-5  # nn.BatchNorm2d default eps


# --------------------------------------------------------------------------
# glue: zero pad + space-to-depth (1x data movement, no 9x im2col in HBM)
# --------------------------------------------------------------------------
def _space_to_depth2(xp):
    """(N, Hp, Wp, C) with even Hp, Wp -> (N, Hp//2, Wp//2, 4*C).

    Channel block index = 2*row_parity + col_parity, matching the conv kernel."""
    n, hp, wp, c = xp.shape
    x = xp.reshape(n, hp // 2, 2, wp // 2, 2, c)
    x = jnp.transpose(x, (0, 1, 3, 2, 4, 5))
    return x.reshape(n, hp // 2, wp // 2, 4 * c)


# --------------------------------------------------------------------------
# Phase A: stride-2 3x3 conv as ONE K-concat MXU matmul + per-sample BN stats
# --------------------------------------------------------------------------
def _conv_stats_kernel(x_ref, w_ref, y_ref, s_ref, *, ho, wo, cin, cout):
    # x_ref: (1, ho+1, wo+1, 4*cin) bf16  space-to-depth of the zero-padded input
    # w_ref: (9*cin, cout)          bf16  row = (kh*3+kw)*cin + ci
    # y_ref: (1, ho*wo, cout)       f32   raw (pre-BN) conv output
    # s_ref: (1, 1, 2*cout)         f32   per-sample [sum | sum_sq] over ho*wo rows
    x = x_ref[0]                                        # (hq, wq, 4*cin) bf16
    taps = []
    for kh in range(3):
        for kw in range(3):
            ro, pr = kh // 2, kh % 2
            co, pc = kw // 2, kw % 2
            blk = 2 * pr + pc
            tap = x[ro:ro + ho, co:co + wo, blk * cin:(blk + 1) * cin]
            taps.append(tap.reshape(ho * wo, cin))
    patch = jnp.concatenate(taps, axis=1)               # (M, 9*cin) bf16, built in VMEM
    acc = jnp.dot(patch, w_ref[...],
                  preferred_element_type=jnp.float32)   # single MXU matmul, f32 accum
    y_ref[0] = acc
    ssum = jnp.sum(acc, axis=0, keepdims=True)
    ssq = jnp.sum(acc * acc, axis=0, keepdims=True)
    s_ref[0] = jnp.concatenate([ssum, ssq], axis=1)     # (1, 2*cout) lane-concat row


def _conv_bn_stats(xs, w2d, ho, wo, cin, cout):
    n, hq, wq, _ = xs.shape
    kernel = functools.partial(_conv_stats_kernel, ho=ho, wo=wo, cin=cin, cout=cout)
    y_raw, stats = pl.pallas_call(
        kernel,
        out_shape=(jax.ShapeDtypeStruct((n, ho * wo, cout), jnp.float32),
                   jax.ShapeDtypeStruct((n, 1, 2 * cout), jnp.float32)),
        grid=(n,),
        in_specs=[
            pl.BlockSpec((1, hq, wq, 4 * cin), lambda i: (i, 0, 0, 0)),
            pl.BlockSpec((9 * cin, cout), lambda i: (0, 0)),   # resident weights
        ],
        out_specs=(
            pl.BlockSpec((1, ho * wo, cout), lambda i: (i, 0, 0)),
            pl.BlockSpec((1, 1, 2 * cout), lambda i: (i, 0, 0)),
        ),
        compiler_params=pltpu.CompilerParams(dimension_semantics=("parallel",)),
    )(xs, w2d)
    return y_raw, stats


def _bn_scale_shift(stats, gamma, beta, count):
    # Tiny per-channel reduction in XLA (keeps the conv grid axis "parallel").
    tot = jnp.sum(stats, axis=(0, 1))                   # (2*C,)
    c = gamma.shape[0]
    mean = tot[:c] / count
    # TODO(synk): single-pass E[x^2]-E[x]^2 variance; use a two-pass reduction for
    # production-accuracy BN (fine at this scale / tolerance).
    var = tot[c:] / count - mean * mean                 # biased var (train-mode BN)
    scale = gamma * jax.lax.rsqrt(var + EPS)
    shift = beta - mean * scale
    return scale, shift


# --------------------------------------------------------------------------
# Fused head (per-sample, gridded over N):
#   BN2 + ReLU -> [mean pool + fc folded into one matmul] -> last -> sigmoid
# --------------------------------------------------------------------------
def _head_kernel(y_ref, sc_ref, sh_ref, pfw_ref, fcb_ref, lw_ref, lb_ref, o_ref):
    # y_ref:  (1, 1, D2) f32  flat per-sample conv-2 raw output (lane-dense)
    # sc/sh:  (1, D2)         BN scale/shift tiled per position
    # pfw:    (D2, C)         mean-pool + fc.weight^T folded into one matrix
    y = jnp.maximum(y_ref[0] * sc_ref[...] + sh_ref[...], 0.0)               # (1, D2)
    h = jnp.dot(y, pfw_ref[...], preferred_element_type=jnp.float32) + fcb_ref[...]
    o = jnp.sum(h * lw_ref[...], axis=1, keepdims=True) + lb_ref[...]        # (1, 1)
    o_ref[0] = 1.0 / (1.0 + jnp.exp(-o))                                     # sigmoid


def _head(y2_flat, sc_t, sh_t, pf_w, fc_b, last_w, last_b):
    n, _, d2 = y2_flat.shape
    c = fc_b.shape[1]
    return pl.pallas_call(
        _head_kernel,
        out_shape=jax.ShapeDtypeStruct((n, 1, 1), jnp.float32),
        grid=(n,),
        in_specs=[
            pl.BlockSpec((1, 1, d2), lambda i: (i, 0, 0)),
            pl.BlockSpec((1, d2), lambda i: (0, 0)),
            pl.BlockSpec((1, d2), lambda i: (0, 0)),
            pl.BlockSpec((d2, c), lambda i: (0, 0)),
            pl.BlockSpec((1, c), lambda i: (0, 0)),
            pl.BlockSpec((1, c), lambda i: (0, 0)),
            pl.BlockSpec((1, 1), lambda i: (0, 0)),
        ],
        out_specs=pl.BlockSpec((1, 1, 1), lambda i: (i, 0, 0)),
        compiler_params=pltpu.CompilerParams(dimension_semantics=("parallel",)),
    )(y2_flat, sc_t, sh_t, pf_w, fc_b, last_w, last_b)


# --------------------------------------------------------------------------
# Full forward (PyTorch-facing: NCHW in, (N,1,1,1) out)
# --------------------------------------------------------------------------
def confidence_scorer_2d(x_nchw, params):
    n, cin, h, w = x_nchw.shape
    cmid = params["g1"].shape[0]
    assert h % 4 == 0 and w % 4 == 0  # TODO(synk): odd spatial sizes need extra pad handling
    ho, wo = h // 2, w // 2
    h2, w2 = ho // 2, wo // 2

    # NCHW -> NHWC and a single bf16 cast in the XLA glue (halves conv-1 input DMA,
    # no per-tap casts in-kernel).
    x = jnp.transpose(x_nchw, (0, 2, 3, 1)).astype(jnp.bfloat16)

    # conv weights (Cout, Cin, 3, 3) -> (9*Cin, Cout) bf16; row = (kh*3+kw)*Cin + ci
    w1_2d = jnp.transpose(params["w1"], (2, 3, 1, 0)).reshape(9 * cin, cmid).astype(jnp.bfloat16)
    w2_2d = jnp.transpose(params["w2"], (2, 3, 1, 0)).reshape(9 * cmid, cmid).astype(jnp.bfloat16)

    # ---- block 1: conv(s=2) + per-sample stats -> scale/shift ----
    xs1 = _space_to_depth2(jnp.pad(x, ((0, 0), (1, 1), (1, 1), (0, 0))))
    y1_raw, s1 = _conv_bn_stats(xs1, w1_2d, ho, wo, cin, cmid)     # (N, Ho*Wo, C) f32
    sc1, sh1 = _bn_scale_shift(s1, params["g1"], params["b1"], n * ho * wo)

    # BN1 + ReLU folded into the XLA glue (fuses with the pad + space-to-depth below).
    # ReLU is applied BEFORE the zero-pad so the conv-2 halo stays exactly zero.
    # Stored bf16 (inter-stage HBM traffic halved); BN math itself stays f32.
    y1 = jnp.maximum(
        y1_raw.reshape(n, ho, wo, cmid) * sc1.reshape(1, 1, 1, -1) + sh1.reshape(1, 1, 1, -1),
        0.0).astype(jnp.bfloat16)

    # ---- block 2: conv(s=2) + per-sample stats ----
    xs2 = _space_to_depth2(jnp.pad(y1, ((0, 0), (1, 1), (1, 1), (0, 0))))
    y2_raw, s2 = _conv_bn_stats(xs2, w2_2d, h2, w2, cmid, cmid)    # (N, H2*W2, C) f32
    sc2, sh2 = _bn_scale_shift(s2, params["g2"], params["b2"], n * h2 * w2)

    # ---- fused head: BN2 + ReLU + global mean pool + fc + last + sigmoid ----
    hw = h2 * w2
    d2 = hw * cmid
    y2_flat = y2_raw.reshape(n, 1, d2)               # free metadata reshape (dense HBM)
    sc2_t = jnp.tile(sc2.reshape(1, -1), (1, hw))    # (1, D2) per-position scale
    sh2_t = jnp.tile(sh2.reshape(1, -1), (1, hw))
    # mean-pool and fc are both linear -> fold into one (D2, C) matrix.
    pf_w = jnp.tile(params["fc_w"].T, (hw, 1)) * (1.0 / hw)        # (D2, C)
    fc_b = params["fc_b"].reshape(1, -1)
    last_w = params["last_w"].reshape(1, -1)         # (1, C)
    last_b = params["last_b"].reshape(1, 1)

    out = _head(y2_flat, sc2_t, sh2_t, pf_w, fc_b, last_w, last_b)  # (N, 1, 1)
    return out.reshape(n, 1, 1, 1)


# --------------------------------------------------------------------------
# Pure-JAX (XLA) reference mirroring PyTorch train-mode ConfidenceScorer2D
# --------------------------------------------------------------------------
def _reference(x, params):
    def conv_bn_relu(x, w, g, b):
        y = jax.lax.conv_general_dilated(
            x, w, window_strides=(2, 2), padding=((1, 1), (1, 1)),
            dimension_numbers=("NCHW", "OIHW", "NCHW"))
        mean = jnp.mean(y, axis=(0, 2, 3), keepdims=True)
        var = jnp.mean(jnp.square(y - mean), axis=(0, 2, 3), keepdims=True)
        yh = (y - mean) * jax.lax.rsqrt(var + EPS)
        return jnp.maximum(yh * g.reshape(1, -1, 1, 1) + b.reshape(1, -1, 1, 1), 0.0)

    y = conv_bn_relu(x, params["w1"], params["g1"], params["b1"])
    y = conv_bn_relu(y, params["w2"], params["g2"], params["b2"])
    pooled = jnp.mean(y, axis=(2, 3))
    hdn = pooled @ params["fc_w"].T + params["fc_b"]
    o = hdn @ params["last_w"].T + params["last_b"]
    return (1.0 / (1.0 + jnp.exp(-o))).reshape(-1, 1, 1, 1)


if __name__ == "__main__":
    N, Cin, H, W = 2, 4, 16, 16
    Cmid = 32

    key = jax.random.PRNGKey(0)
    k = jax.random.split(key, 11)
    x = jax.random.normal(k[0], (N, Cin, H, W), jnp.float32)
    params = {
        "w1": 0.1 * jax.random.normal(k[1], (Cmid, Cin, 3, 3), jnp.float32),
        "g1": 1.0 + 0.1 * jax.random.normal(k[2], (Cmid,), jnp.float32),
        "b1": 0.1 * jax.random.normal(k[3], (Cmid,), jnp.float32),
        "w2": 0.1 * jax.random.normal(k[4], (Cmid, Cmid, 3, 3), jnp.float32),
        "g2": 1.0 + 0.1 * jax.random.normal(k[5], (Cmid,), jnp.float32),
        "b2": 0.1 * jax.random.normal(k[6], (Cmid,), jnp.float32),
        "fc_w": 0.2 * jax.random.normal(k[7], (Cmid, Cmid), jnp.float32),
        "fc_b": 0.1 * jax.random.normal(k[8], (Cmid,), jnp.float32),
        "last_w": 0.2 * jax.random.normal(k[9], (1, Cmid), jnp.float32),
        "last_b": 0.1 * jax.random.normal(k[10], (1,), jnp.float32),
    }

    out = jax.block_until_ready(jax.jit(confidence_scorer_2d)(x, params))
    ref = jax.block_until_ready(_reference(x, params))
    assert out.shape == (N, 1, 1, 1), out.shape
    np.testing.assert_allclose(np.asarray(out), np.asarray(ref), atol=2e-2, rtol=2e-2)
    print("KERNEL_OK")
</pallas_src>

<mosaic_0001>
module attributes {stable_mosaic.version = 11 : i64} {
  func.func @_conv_stats_kernel(%arg0: i32, %arg1: memref<1x9x9x16xbf16, #tpu.memory_space<vmem>>, %arg2: memref<36x32xbf16, #tpu.memory_space<vmem>>, %arg3: memref<1x64x32xf32, #tpu.memory_space<vmem>>, %arg4: memref<1x1x64xf32, #tpu.memory_space<vmem>>) attributes {dimension_semantics = [#tpu.dimension_semantics<parallel>], iteration_bounds = array<i64: 2>, scalar_prefetch = 0 : i64, scratch_operands = 0 : i64, tpu.core_type = #tpu.core_type<tc>, window_params = [{transform_indices = @transform_0, window_bounds = array<i64: 1, 9, 9, 16>}, {pipeline_mode = #tpu.pipeline_mode<synchronous>, transform_indices = @transform_1, window_bounds = array<i64: 36, 32>}, {transform_indices = @transform_2, window_bounds = array<i64: 1, 64, 32>}, {transform_indices = @transform_3, window_bounds = array<i64: 1, 1, 64>}]} {
    %c0 = arith.constant 0 : index
    %c0_0 = arith.constant 0 : index
    %c0_1 = arith.constant 0 : index
    %c0_2 = arith.constant 0 : index
    %0 = vector.load %arg1[%c0, %c0_0, %c0_1, %c0_2] : memref<1x9x9x16xbf16, #tpu.memory_space<vmem>>, vector<1x9x9x16xbf16>
    %1 = vector.shape_cast %0 : vector<1x9x9x16xbf16> to vector<9x9x16xbf16>
    %2 = vector.extract_strided_slice %1 {offsets = [0, 0, 0], sizes = [8, 8, 4], strides = [1, 1, 1]} : vector<9x9x16xbf16> to vector<8x8x4xbf16>
    %3 = vector.shape_cast %2 : vector<8x8x4xbf16> to vector<64x4xbf16>
    %4 = vector.extract_strided_slice %1 {offsets = [0, 0, 4], sizes = [8, 8, 4], strides = [1, 1, 1]} : vector<9x9x16xbf16> to vector<8x8x4xbf16>
    %5 = vector.shape_cast %4 : vector<8x8x4xbf16> to vector<64x4xbf16>
    %6 = vector.extract_strided_slice %1 {offsets = [0, 1, 0], sizes = [8, 8, 4], strides = [1, 1, 1]} : vector<9x9x16xbf16> to vector<8x8x4xbf16>
    %7 = vector.shape_cast %6 : vector<8x8x4xbf16> to vector<64x4xbf16>
    %8 = vector.extract_strided_slice %1 {offsets = [0, 0, 8], sizes = [8, 8, 4], strides = [1, 1, 1]} : vector<9x9x16xbf16> to vector<8x8x4xbf16>
    %9 = vector.shape_cast %8 : vector<8x8x4xbf16> to vector<64x4xbf16>
    %10 = vector.extract_strided_slice %1 {offsets = [0, 0, 12], sizes = [8, 8, 4], strides = [1, 1, 1]} : vector<9x9x16xbf16> to vector<8x8x4xbf16>
    %11 = vector.shape_cast %10 : vector<8x8x4xbf16> to vector<64x4xbf16>
    %12 = vector.extract_strided_slice %1 {offsets = [0, 1, 8], sizes = [8, 8, 4], strides = [1, 1, 1]} : vector<9x9x16xbf16> to vector<8x8x4xbf16>
    %13 = vector.shape_cast %12 : vector<8x8x4xbf16> to vector<64x4xbf16>
    %14 = vector.extract_strided_slice %1 {offsets = [1, 0, 0], sizes = [8, 8, 4], strides = [1, 1, 1]} : vector<9x9x16xbf16> to vector<8x8x4xbf16>
    %15 = vector.shape_cast %14 : vector<8x8x4xbf16> to vector<64x4xbf16>
    %16 = vector.extract_strided_slice %1 {offsets = [1, 0, 4], sizes = [8, 8, 4], strides = [1, 1, 1]} : vector<9x9x16xbf16> to vector<8x8x4xbf16>
    %17 = vector.shape_cast %16 : vector<8x8x4xbf16> to vector<64x4xbf16>
    %18 = vector.extract_strided_slice %1 {offsets = [1, 1, 0], sizes = [8, 8, 4], strides = [1, 1, 1]} : vector<9x9x16xbf16> to vector<8x8x4xbf16>
    %19 = vector.shape_cast %18 : vector<8x8x4xbf16> to vector<64x4xbf16>
    %20 = tpu.concatenate %3, %5, %7, %9, %11, %13, %15, %17, %19 in 1 : vector<64x4xbf16>, vector<64x4xbf16>, vector<64x4xbf16>, vector<64x4xbf16>, vector<64x4xbf16>, vector<64x4xbf16>, vector<64x4xbf16>, vector<64x4xbf16>, vector<64x4xbf16> -> vector<64x36xbf16>
    %c0_3 = arith.constant 0 : index
    %c0_4 = arith.constant 0 : index
    %21 = vector.load %arg2[%c0_3, %c0_4] : memref<36x32xbf16, #tpu.memory_space<vmem>>, vector<36x32xbf16>
    %cst = arith.constant dense<0.000000e+00> : vector<64x32xf32>
    %22 = tpu.matmul %20, %21, %cst {dimension_numbers = #tpu.dot_dimension_numbers<[1], [0], [0], [1], [0, 0, 1, 1], [], []>} : vector<64x36xbf16>, vector<36x32xbf16>, vector<64x32xf32> -> vector<64x32xf32>
    %c0_5 = arith.constant 0 : index
    %c0_6 = arith.constant 0 : index
    %c0_7 = arith.constant 0 : index
    %23 = vector.load %arg3[%c0_5, %c0_6, %c0_7] : memref<1x64x32xf32, #tpu.memory_space<vmem>>, vector<1x64x32xf32>
    %24 = vector.shape_cast %23 : vector<1x64x32xf32> to vector<64x32xf32>
    %25 = vector.shape_cast %22 : vector<64x32xf32> to vector<1x64x32xf32>
    tpu.vector_store %arg3[%c0_5, %c0_6, %c0_7], %25 {strides = array<i32>} : memref<1x64x32xf32, #tpu.memory_space<vmem>>, vector<1x64x32xf32>,
    %cst_8 = arith.constant dense<0.000000e+00> : vector<32xf32>
    %26 = vector.multi_reduction <add>, %22, %cst_8 [0] : vector<64x32xf32> to vector<32xf32>
    %27 = vector.shape_cast %26 : vector<32xf32> to vector<1x32xf32>
    %28 = arith.mulf %22, %22 : vector<64x32xf32>
    %cst_9 = arith.constant dense<0.000000e+00> : vector<32xf32>
    %29 = vector.multi_reduction <add>, %28, %cst_9 [0] : vector<64x32xf32> to vector<32xf32>
    %30 = vector.shape_cast %29 : vector<32xf32> to vector<1x32xf32>
    %31 = tpu.concatenate %27, %30 in 1 : vector<1x32xf32>, vector<1x32xf32> -> vector<1x64xf32>
    %c0_10 = arith.constant 0 : index
    %c0_11 = arith.constant 0 : index
    %c0_12 = arith.constant 0 : index
    %32 = vector.load %arg4[%c0_10, %c0_11, %c0_12] : memref<1x1x64xf32, #tpu.memory_space<vmem>>, vector<1x1x64xf32>
    %33 = vector.shape_cast %32 : vector<1x1x64xf32> to vector<1x64xf32>
    %34 = vector.shape_cast %31 : vector<1x64xf32> to vector<1x1x64xf32>
    tpu.vector_store %arg4[%c0_10, %c0_11, %c0_12], %34 {strides = array<i32>} : memref<1x1x64xf32, #tpu.memory_space<vmem>>, vector<1x1x64xf32>,
    return
  }
  func.func @transform_0(%arg0: i32) -> (i32, i32, i32, i32) {
    %c0_i32 = arith.constant 0 : i32
    %c0_i32_0 = arith.constant 0 : i32
    %c0_i32_1 = arith.constant 0 : i32
    %c0_i32_2 = arith.constant 0 : i32
    return %arg0, %c0_i32, %c0_i32_0, %c0_i32_1 : i32, i32, i32, i32
  }
  func.func @transform_1(%arg0: i32) -> (i32, i32) {
    %c0_i32 = arith.constant 0 : i32
    %c0_i32_0 = arith.constant 0 : i32
    %c0_i32_1 = arith.constant 0 : i32
    return %c0_i32, %c0_i32_0 : i32, i32
  }
  func.func @transform_2(%arg0: i32) -> (i32, i32, i32) {
    %c0_i32 = arith.constant 0 : i32
    %c0_i32_0 = arith.constant 0 : i32
    %c0_i32_1 = arith.constant 0 : i32
    return %arg0, %c0_i32, %c0_i32_0 : i32, i32, i32
  }
  func.func @transform_3(%arg0: i32) -> (i32, i32, i32) {
    %c0_i32 = arith.constant 0 : i32
    %c0_i32_0 = arith.constant 0 : i32
    %c0_i32_1 = arith.constant 0 : i32
    return %arg0, %c0_i32, %c0_i32_0 : i32, i32, i32
  }
}

module attributes {stable_mosaic.version = 11 : i64} {
  func.func @_conv_stats_kernel(%arg0: i32, %arg1: memref<1x5x5x128xbf16, #tpu.memory_space<vmem>>, %arg2: memref<288x32xbf16, #tpu.memory_space<vmem>>, %arg3: memref<1x16x32xf32, #tpu.memory_space<vmem>>, %arg4: memref<1x1x64xf32, #tpu.memory_space<vmem>>) attributes {dimension_semantics = [#tpu.dimension_semantics<parallel>], iteration_bounds = array<i64: 2>, scalar_prefetch = 0 : i64, scratch_operands = 0 : i64, tpu.core_type = #tpu.core_type<tc>, window_params = [{transform_indices = @transform_0, window_bounds = array<i64: 1, 5, 5, 128>}, {pipeline_mode = #tpu.pipeline_mode<synchronous>, transform_indices = @transform_1, window_bounds = array<i64: 288, 32>}, {transform_indices = @transform_2, window_bounds = array<i64: 1, 16, 32>}, {transform_indices = @transform_3, window_bounds = array<i64: 1, 1, 64>}]} {
    %c0 = arith.constant 0 : index
    %c0_0 = arith.constant 0 : index
    %c0_1 = arith.constant 0 : index
    %c0_2 = arith.constant 0 : index
    %0 = vector.load %arg1[%c0, %c0_0, %c0_1, %c0_2] : memref<1x5x5x128xbf16, #tpu.memory_space<vmem>>, vector<1x5x5x128xbf16>
    %1 = vector.shape_cast %0 : vector<1x5x5x128xbf16> to vector<5x5x128xbf16>
    %2 = vector.extract_strided_slice %1 {offsets = [0, 0, 0], sizes = [4, 4, 32], strides = [1, 1, 1]} : vector<5x5x128xbf16> to vector<4x4x32xbf16>
    %3 = vector.shape_cast %2 : vector<4x4x32xbf16> to vector<16x32xbf16>
    %4 = vector.extract_strided_slice %1 {offsets = [0, 0, 32], sizes = [4, 4, 32], strides = [1, 1, 1]} : vector<5x5x128xbf16> to vector<4x4x32xbf16>
    %5 = vector.shape_cast %4 : vector<4x4x32xbf16> to vector<16x32xbf16>
    %6 = vector.extract_strided_slice %1 {offsets = [0, 1, 0], sizes = [4, 4, 32], strides = [1, 1, 1]} : vector<5x5x128xbf16> to vector<4x4x32xbf16>
    %7 = vector.shape_cast %6 : vector<4x4x32xbf16> to vector<16x32xbf16>
    %8 = vector.extract_strided_slice %1 {offsets = [0, 0, 64], sizes = [4, 4, 32], strides = [1, 1, 1]} : vector<5x5x128xbf16> to vector<4x4x32xbf16>
    %9 = vector.shape_cast %8 : vector<4x4x32xbf16> to vector<16x32xbf16>
    %10 = vector.extract_strided_slice %1 {offsets = [0, 0, 96], sizes = [4, 4, 32], strides = [1, 1, 1]} : vector<5x5x128xbf16> to vector<4x4x32xbf16>
    %11 = vector.shape_cast %10 : vector<4x4x32xbf16> to vector<16x32xbf16>
    %12 = vector.extract_strided_slice %1 {offsets = [0, 1, 64], sizes = [4, 4, 32], strides = [1, 1, 1]} : vector<5x5x128xbf16> to vector<4x4x32xbf16>
    %13 = vector.shape_cast %12 : vector<4x4x32xbf16> to vector<16x32xbf16>
    %14 = vector.extract_strided_slice %1 {offsets = [1, 0, 0], sizes = [4, 4, 32], strides = [1, 1, 1]} : vector<5x5x128xbf16> to vector<4x4x32xbf16>
    %15 = vector.shape_cast %14 : vector<4x4x32xbf16> to vector<16x32xbf16>
    %16 = vector.extract_strided_slice %1 {offsets = [1, 0, 32], sizes = [4, 4, 32], strides = [1, 1, 1]} : vector<5x5x128xbf16> to vector<4x4x32xbf16>
    %17 = vector.shape_cast %16 : vector<4x4x32xbf16> to vector<16x32xbf16>
    %18 = vector.extract_strided_slice %1 {offsets = [1, 1, 0], sizes = [4, 4, 32], strides = [1, 1, 1]} : vector<5x5x128xbf16> to vector<4x4x32xbf16>
    %19 = vector.shape_cast %18 : vector<4x4x32xbf16> to vector<16x32xbf16>
    %20 = tpu.concatenate %3, %5, %7, %9, %11, %13, %15, %17, %19 in 1 : vector<16x32xbf16>, vector<16x32xbf16>, vector<16x32xbf16>, vector<16x32xbf16>, vector<16x32xbf16>, vector<16x32xbf16>, vector<16x32xbf16>, vector<16x32xbf16>, vector<16x32xbf16> -> vector<16x288xbf16>
    %c0_3 = arith.constant 0 : index
    %c0_4 = arith.constant 0 : index
    %21 = vector.load %arg2[%c0_3, %c0_4] : memref<288x32xbf16, #tpu.memory_space<vmem>>, vector<288x32xbf16>
    %cst = arith.constant dense<0.000000e+00> : vector<16x32xf32>
    %22 = tpu.matmul %20, %21, %cst {dimension_numbers = #tpu.dot_dimension_numbers<[1], [0], [0], [1], [0, 0, 1, 1], [], []>} : vector<16x288xbf16>, vector<288x32xbf16>, vector<16x32xf32> -> vector<16x32xf32>
    %c0_5 = arith.constant 0 : index
    %c0_6 = arith.constant 0 : index
    %c0_7 = arith.constant 0 : index
    %23 = vector.load %arg3[%c0_5, %c0_6, %c0_7] : memref<1x16x32xf32, #tpu.memory_space<vmem>>, vector<1x16x32xf32>
    %24 = vector.shape_cast %23 : vector<1x16x32xf32> to vector<16x32xf32>
    %25 = vector.shape_cast %22 : vector<16x32xf32> to vector<1x16x32xf32>
    tpu.vector_store %arg3[%c0_5, %c0_6, %c0_7], %25 {strides = array<i32>} : memref<1x16x32xf32, #tpu.memory_space<vmem>>, vector<1x16x32xf32>,
    %cst_8 = arith.constant dense<0.000000e+00> : vector<32xf32>
    %26 = vector.multi_reduction <add>, %22, %cst_8 [0] : vector<16x32xf32> to vector<32xf32>
    %27 = vector.shape_cast %26 : vector<32xf32> to vector<1x32xf32>
    %28 = arith.mulf %22, %22 : vector<16x32xf32>
    %cst_9 = arith.constant dense<0.000000e+00> : vector<32xf32>
    %29 = vector.multi_reduction <add>, %28, %cst_9 [0] : vector<16x32xf32> to vector<32xf32>
    %30 = vector.shape_cast %29 : vector<32xf32> to vector<1x32xf32>
    %31 = tpu.concatenate %27, %30 in 1 : vector<1x32xf32>, vector<1x32xf32> -> vector<1x64xf32>
    %c0_10 = arith.constant 0 : index
    %c0_11 = arith.constant 0 : index
    %c0_12 = arith.constant 0 : index
    %32 = vector.load %arg4[%c0_10, %c0_11, %c0_12] : memref<1x1x64xf32, #tpu.memory_space<vmem>>, vector<1x1x64xf32>
    %33 = vector.shape_cast %32 : vector<1x1x64xf32> to vector<1x64xf32>
    %34 = vector.shape_cast %31 : vector<1x64xf32> to vector<1x1x64xf32>
    tpu.vector_store %arg4[%c0_10, %c0_11, %c0_12], %34 {strides = array<i32>} : memref<1x1x64xf32, #tpu.memory_space<vmem>>, vector<1x1x64xf32>,
    return
  }
  func.func @transform_0(%arg0: i32) -> (i32, i32, i32, i32) {
    %c0_i32 = arith.constant 0 : i32
    %c0_i32_0 = arith.constant 0 : i32
    %c0_i32_1 = arith.constant 0 : i32
    %c0_i32_2 = arith.constant 0 : i32
    return %arg0, %c0_i32, %c0_i32_0, %c0_i32_1 : i32, i32, i32, i32
  }
  func.func @transform_1(%arg0: i32) -> (i32, i32) {
    %c0_i32 = arith.constant 0 : i32
    %c0_i32_0 = arith.constant 0 : i32
    %c0_i32_1 = arith.constant 0 : i32
    return %c0_i32, %c0_i32_0 : i32, i32
  }
  func.func @transform_2(%arg0: i32) -> (i32, i32, i32) {
    %c0_i32 = arith.constant 0 : i32
    %c0_i32_0 = arith.constant 0 : i32
    %c0_i32_1 = arith.constant 0 : i32
    return %arg0, %c0_i32, %c0_i32_0 : i32, i32, i32
  }
  func.func @transform_3(%arg0: i32) -> (i32, i32, i32) {
    %c0_i32 = arith.constant 0 : i32
    %c0_i32_0 = arith.constant 0 : i32
    %c0_i32_1 = arith.constant 0 : i32
    return %arg0, %c0_i32, %c0_i32_0 : i32, i32, i32
  }
}

module attributes {stable_mosaic.version = 11 : i64} {
  func.func @_head_kernel(%arg0: i32, %arg1: memref<1x1x512xf32, #tpu.memory_space<vmem>>, %arg2: memref<1x512xf32, #tpu.memory_space<vmem>>, %arg3: memref<1x512xf32, #tpu.memory_space<vmem>>, %arg4: memref<512x32xf32, #tpu.memory_space<vmem>>, %arg5: memref<1x32xf32, #tpu.memory_space<vmem>>, %arg6: memref<1x32xf32, #tpu.memory_space<vmem>>, %arg7: memref<1x1xf32, #tpu.memory_space<vmem>>, %arg8: memref<1x1x1xf32, #tpu.memory_space<vmem>>) attributes {dimension_semantics = [#tpu.dimension_semantics<parallel>], iteration_bounds = array<i64: 2>, scalar_prefetch = 0 : i64, scratch_operands = 0 : i64, tpu.core_type = #tpu.core_type<tc>, window_params = [{transform_indices = @transform_0, window_bounds = array<i64: 1, 1, 512>}, {pipeline_mode = #tpu.pipeline_mode<synchronous>, transform_indices = @transform_1, window_bounds = array<i64: 1, 512>}, {pipeline_mode = #tpu.pipeline_mode<synchronous>, transform_indices = @transform_2, window_bounds = array<i64: 1, 512>}, {pipeline_mode = #tpu.pipeline_mode<synchronous>, transform_indices = @transform_3, window_bounds = array<i64: 512, 32>}, {pipeline_mode = #tpu.pipeline_mode<synchronous>, transform_indices = @transform_4, window_bounds = array<i64: 1, 32>}, {pipeline_mode = #tpu.pipeline_mode<synchronous>, transform_indices = @transform_5, window_bounds = array<i64: 1, 32>}, {pipeline_mode = #tpu.pipeline_mode<synchronous>, transform_indices = @transform_6, window_bounds = array<i64: 1, 1>}, {transform_indices = @transform_7, window_bounds = array<i64: 1, 1, 1>}]} {
    %c0 = arith.constant 0 : index
    %c0_0 = arith.constant 0 : index
    %c0_1 = arith.constant 0 : index
    %0 = vector.load %arg1[%c0, %c0_0, %c0_1] : memref<1x1x512xf32, #tpu.memory_space<vmem>>, vector<1x1x512xf32>
    %1 = vector.shape_cast %0 : vector<1x1x512xf32> to vector<1x512xf32>
    %c0_2 = arith.constant 0 : index
    %c0_3 = arith.constant 0 : index
    %2 = vector.load %arg2[%c0_2, %c0_3] : memref<1x512xf32, #tpu.memory_space<vmem>>, vector<1x512xf32>
    %3 = arith.mulf %1, %2 : vector<1x512xf32>
    %c0_4 = arith.constant 0 : index
    %c0_5 = arith.constant 0 : index
    %4 = vector.load %arg3[%c0_4, %c0_5] : memref<1x512xf32, #tpu.memory_space<vmem>>, vector<1x512xf32>
    %5 = arith.addf %3, %4 : vector<1x512xf32>
    %cst = arith.constant 0.000000e+00 : f32
    %6 = vector.broadcast %cst : f32 to vector<1x512xf32>
    %7 = arith.maximumf %5, %6 : vector<1x512xf32>
    %c0_6 = arith.constant 0 : index
    %c0_7 = arith.constant 0 : index
    %8 = vector.load %arg4[%c0_6, %c0_7] : memref<512x32xf32, #tpu.memory_space<vmem>>, vector<512x32xf32>
    %cst_8 = arith.constant dense<0.000000e+00> : vector<1x32xf32>
    %9 = tpu.matmul %7, %8, %cst_8 {dimension_numbers = #tpu.dot_dimension_numbers<[1], [0], [0], [1], [0, 0, 1, 1], [], []>} : vector<1x512xf32>, vector<512x32xf32>, vector<1x32xf32> -> vector<1x32xf32>
    %c0_9 = arith.constant 0 : index
    %c0_10 = arith.constant 0 : index
    %10 = vector.load %arg5[%c0_9, %c0_10] : memref<1x32xf32, #tpu.memory_space<vmem>>, vector<1x32xf32>
    %11 = arith.addf %9, %10 : vector<1x32xf32>
    %c0_11 = arith.constant 0 : index
    %c0_12 = arith.constant 0 : index
    %12 = vector.load %arg6[%c0_11, %c0_12] : memref<1x32xf32, #tpu.memory_space<vmem>>, vector<1x32xf32>
    %13 = arith.mulf %11, %12 : vector<1x32xf32>
    %cst_13 = arith.constant dense<0.000000e+00> : vector<1xf32>
    %14 = vector.multi_reduction <add>, %13, %cst_13 [1] : vector<1x32xf32> to vector<1xf32>
    %15 = vector.shape_cast %14 : vector<1xf32> to vector<1x1xf32>
    %c0_14 = arith.constant 0 : index
    %c0_15 = arith.constant 0 : index
    %16 = vector.load %arg7[%c0_14, %c0_15] : memref<1x1xf32, #tpu.memory_space<vmem>>, vector<1x1xf32>
    %17 = arith.addf %15, %16 : vector<1x1xf32>
    %cst_16 = arith.constant 0.000000e+00 : f32
    %18 = vector.broadcast %cst_16 : f32 to vector<1x1xf32>
    %19 = arith.subf %18, %17 : vector<1x1xf32>
    %20 = math.exp %19 : vector<1x1xf32>
    %cst_17 = arith.constant 1.000000e+00 : f32
    %21 = vector.broadcast %cst_17 : f32 to vector<1x1xf32>
    %22 = arith.addf %21, %20 : vector<1x1xf32>
    %cst_18 = arith.constant 1.000000e+00 : f32
    %23 = vector.broadcast %cst_18 : f32 to vector<1x1xf32>
    %24 = arith.divf %23, %22 : vector<1x1xf32>
    %c0_19 = arith.constant 0 : index
    %c0_20 = arith.constant 0 : index
    %c0_21 = arith.constant 0 : index
    %25 = vector.load %arg8[%c0_19, %c0_20, %c0_21] : memref<1x1x1xf32, #tpu.memory_space<vmem>>, vector<1x1x1xf32>
    %26 = vector.shape_cast %25 : vector<1x1x1xf32> to vector<1x1xf32>
    %27 = vector.shape_cast %24 : vector<1x1xf32> to vector<1x1x1xf32>
    tpu.vector_store %arg8[%c0_19, %c0_20, %c0_21], %27 {strides = array<i32>} : memref<1x1x1xf32, #tpu.memory_space<vmem>>, vector<1x1x1xf32>,
    return
  }
  func.func @transform_0(%arg0: i32) -> (i32, i32, i32) {
    %c0_i32 = arith.constant 0 : i32
    %c0_i32_0 = arith.constant 0 : i32
    %c0_i32_1 = arith.constant 0 : i32
    return %arg0, %c0_i32, %c0_i32_0 : i32, i32, i32
  }
  func.func @transform_1(%arg0: i32) -> (i32, i32) {
    %c0_i32 = arith.constant 0 : i32
    %c0_i32_0 = arith.constant 0 : i32
    %c0_i32_1 = arith.constant 0 : i32
    return %c0_i32, %c0_i32_0 : i32, i32
  }
  func.func @transform_2(%arg0: i32) -> (i32, i32) {
    %c0_i32 = arith.constant 0 : i32
    %c0_i32_0 = arith.constant 0 : i32
    %c0_i32_1 = arith.constant 0 : i32
    return %c0_i32, %c0_i32_0 : i32, i32
  }
  func.func @transform_3(%arg0: i32) -> (i32, i32) {
    %c0_i32 = arith.constant 0 : i32
    %c0_i32_0 = arith.constant 0 : i32
    %c0_i32_1 = arith.constant 0 : i32
    return %c0_i32, %c0_i32_0 : i32, i32
  }
  func.func @transform_4(%arg0: i32) -> (i32, i32) {
    %c0_i32 = arith.constant 0 : i32
    %c0_i32_0 = arith.constant 0 : i32
    %c0_i32_1 = arith.constant 0 : i32
    return %c0_i32, %c0_i32_0 : i32, i32
  }
  func.func @transform_5(%arg0: i32) -> (i32, i32) {
    %c0_i32 = arith.constant 0 : i32
    %c0_i32_0 = arith.constant 0 : i32
    %c0_i32_1 = arith.constant 0 : i32
    return %c0_i32, %c0_i32_0 : i32, i32
  }
  func.func @transform_6(%arg0: i32) -> (i32, i32) {
    %c0_i32 = arith.constant 0 : i32
    %c0_i32_0 = arith.constant 0 : i32
    %c0_i32_1 = arith.constant 0 : i32
    return %c0_i32, %c0_i32_0 : i32, i32
  }
  func.func @transform_7(%arg0: i32) -> (i32, i32, i32) {
    %c0_i32 = arith.constant 0 : i32
    %c0_i32_0 = arith.constant 0 : i32
    %c0_i32_1 = arith.constant 0 : i32
    return %arg0, %c0_i32, %c0_i32_0 : i32, i32, i32
  }
}

</mosaic_0001>

<bundles_post_ra>
// kernel: confidence_scorer_2d.3
= control target key start
LH: loop header
LB: loop body
LE: loop exit
PB: predicated region body
PF: predicated region fallthrough
CT: control target
= control target key end

     0   :  { %s758_s12 = smov 0   ;;  %s992_s0 = inlined_call_operand.vmem [shape: bf16[2,9,9,16], index: 0, kind: input, shape index: {}]   ;;  %s993_s1 = inlined_call_operand.vmem [shape: bf16[36,32], index: 1, kind: input, shape index: {}]   ;;  %s994_s2 = inlined_call_operand.vmem [shape: f32[2,64,32], index: 2, kind: output, shape index: {0}]   ;;  %s995_s3 = inlined_call_operand.vmem [shape: f32[2,1,64], index: 3, kind: output, shape index: {1}]  }
   0x1 LB: > { %s677_s13 = sadd.s32 4294967295, %s731_s12   ;;  %p681_p0 = scmp.ge.s32.totalorder %s731_s12, 1  ;;  %s731_s12 = sphi %s758_s12, %s14_s12  }
   0x2   : > { %p140_p1 = scmp.lt.s32.totalorder %s731_s12, 3 }
   0x4   : > { %p141_p2 = pnand %p681_p0, %p140_p1 }
   0x5   : > { %p167_p3 = scmp.lt.s32.totalorder (!%p141_p2), %s677_s13, 1  ;;  %s733_s18 = smov (!%p141_p2), 4  }
   0x6   : > { %144 = sbr.rel (%p141_p2) target bundleno = 440 (0x1b8), region = 28  ;;  %s734_s19 = smov (!%p141_p2), 24  }
   0x7   : > { %s735_s20 = smov (!%p141_p2), 8   ;;  %s736_s21 = smov (!%p141_p2), 12  }
   0x8   : > { %s737_s22 = smov (!%p141_p2), 32  }
   0xb   : > { %s999_s13 = smov (!%p167_p3, %s677_s13), 1  ;;  %vm199_vm0 = vsmask.f32 3328  ;;  %vm200_vm1 = vsmask.f32 7440  ;;  %vm499_vm3 = vcmask 1041408  }
   0xc   : > { %s711_s14 = smul.u32 72, %s999_s13  ;;  %vm822_vm2 = vmor %vm199_vm0, %vm200_vm1  ;;  %vm415_vm4 = vcmask 64512   ;;  %vm424_vm5 = vcmask 97280   ;;  %vm438_vm6 = vcmask 162816   ;;  %vm433_vm7 = vcmask 130048   ;;  %s699_s29 = sshll.u32 %s999_s13, 6 }
   0xd   : > { %vm447_vm8 = vcmask 195584   ;;  %vm456_vm9 = vcmask 228352   ;;  %vm461_vm10 = vcmask 261120   ;;  %vm490_vm11 = vcmask 293888   ;;  %s949_s5 = scalar_lea.vmem %s994_s2, %s699_s29  ;;  %s179_s8 = scalar_lea.vmem %s995_s3, %s999_s13 }
   0xe   : > { %s772_s17 = scalar_lea.vmem %s992_s0, %s711_s14  ;;  %vm595_vm12 = vcmask 516096  }
   0xf   : > { %v775_v0 = vld [vmem:[%s772_s17 + $0x20] sm:$0xf]  ;;  %v778_v1 = vld [vmem:[%s772_s17 + $0x28] sm:$0xf]  ;;  %v185_v20 = vld [vmem:[%s772_s17 + $0x10] sm:$0xf] }
  0x10   : > { %v181_v2 = vld [vmem:[%s772_s17] sm:$0xf]  ;;  %v273_v3 = vshrl.u32 %v778_v1, 16  ;;  %v276_v4 = vshll.u32 %v778_v1, 16  ;;  %v340_v5 = vunpack.c.l.b16 %v775_v0  ;;  %v341_v6 = vunpack.c.l.b16 %v778_v1  ;;  %v183_v7 = vld [vmem:[%s772_s17 + $0x8] sm:$0xf] }
  0x11   : > { %v259_v8 = vshrl.u32 %v775_v0, 16  ;;  %v262_v9 = vshll.u32 %v775_v0, 16  ;;  %v217_v10 = vshrl.u32 %v183_v7, 16  ;;  %v220_v11 = vshll.u32 %v183_v7, 16  ;;  %v798_v24 = vld [vmem:[%s772_s17 + $0x18] sm:$0xf] }
  0x12   : > { %v275_v12 = vrot.slane %v273_v3, 4  ;;  %v278_v13 = vrot.slane %v276_v4, 5  ;;  %v792_v14 = vpack.c.b16 %v341_v6, %v340_v5  ;;  %v336_v15 = vunpack.c.l.b16 %v181_v2  ;;  %v190_v32 = vld [vmem:[%s772_s17 + $0x24] sm:$0x1]  ;;  %v192_v37 = vld [vmem:[%s772_s17 + $0x2c] sm:$0x1] }
  0x13   : > { %v261_v16 = vrot.slane %v259_v8, 4  ;;  %v264_v17 = vrot.slane %v262_v9, 5  ;;  %v219_v18 = vrot.slane %v217_v10, 4  ;;  %v222_v19 = vrot.slane %v220_v11, 5  ;;  %v182_v38 = vld [vmem:[%s772_s17 + $0x4] sm:$0x1] }
  0x14   : > { %372 = vrot.lane.b32.xlu1 %v792_v14, %s733_s18  ;;  %v337_v21 = vunpack.c.l.b16 %v183_v7  ;;  %v203_v22 = vshrl.u32 %v181_v2, 16  ;;  %v206_v23 = vshll.u32 %v181_v2, 16  ;;  %v279_v25 = vor.u32 %v278_v13, %v275_v12  ;;  %v184_v43 = vld [vmem:[%s772_s17 + $0xc] sm:$0x1]  ;;  %v814_v44 = vld [vmem:[%s772_s17 + $0x30] sm:$0xf] }
  0x15   : > { %v265_v26 = vor.u32 %v264_v17, %v261_v16  ;;  %v245_v27 = vshrl.u32 %v798_v24, 16  ;;  %v338_v31 = vunpack.c.l.b16 %v185_v20  ;;  %v223_v33 = vor.u32 %v222_v19, %v219_v18  ;;  %v194_v54 = vld [vmem:[%s772_s17 + $0x34] sm:$0x1]  ;;  %v834_v4 = vld [vmem:[%s772_s17 + $0x38] sm:$0xf] }
  0x16   : > { %v801_v28 = vpack.c.b16 %v337_v21, %v336_v15  ;;  %v205_v29 = vrot.slane %v203_v22, 4  ;;  %v208_v30 = vrot.slane %v206_v23, 5  ;;  %v248_v34 = vshll.u32 %v798_v24, 16  ;;  %v196_v12 = vld [vmem:[%s772_s17 + $0x3c] sm:$0x1] }
  0x17   : > { %v339_v35 = vunpack.c.l.b16 %v798_v24  ;;  %v231_v36 = vshrl.u32 %v185_v20, 16  ;;  %v810_v40 = vrot.slane %v245_v27, 4  ;;  %v234_v41 = vshll.u32 %v185_v20, 16  ;;  %v186_v18 = vld [vmem:[%s772_s17 + $0x14] sm:$0x1] }
  0x18   : > { %368 = vrot.lane.b32.xlu0 %v801_v28, %s733_s18  ;;  %v209_v39 = vor.u32 %v208_v30, %v205_v29  ;;  %v386_v42 = vpack.c.b16 %v338_v31, %v337_v21  ;;  %v266_v47 = vrot.slane %v265_v26, 4  ;;  %v268_v48 = vshll.u32 %v190_v32, 16  ;;  %v188_v27 = vld [vmem:[%s772_s17 + $0x1c] sm:$0x1] }
  0x19   : > { %v818_v45 = vpack.c.b16 %v339_v35, %v338_v31  ;;  %v233_v46 = vrot.slane %v231_v36, 4  ;;  %v280_v50 = vrot.slane %v279_v25, 4  ;;  %v282_v51 = vshll.u32 %v192_v37, 16 }
  0x1a   : > { %v210_v52 = vrot.slane %v209_v39, 4  ;;  %v212_v53 = vshll.u32 %v182_v38, 16  ;;  %v270_v55 = vrot.slane %v268_v48, 5  ;;  %v224_v56 = vrot.slane %v223_v33, 4 }
  0x1b   : > { %v226_v57 = vshll.u32 %v184_v43, 16  ;;  %v287_v58 = vshrl.u32 %v814_v44, 16  ;;  %v236_v59 = vrot.slane %v234_v41, 5  ;;  %v284_v60 = vrot.slane %v282_v51, 5 }
  0x1c   : > { %370 = vrot.lane.b32.xlu1 %v818_v45, %s733_s18  ;;  %v214_v61 = vrot.slane %v212_v53, 5  ;;  %v290_v62 = vshll.u32 %v814_v44, 16  ;;  %v271_v63 = vsel %vm822_vm2, %v266_v47, %v270_v55  ;;  %v296_v7 = vshll.u32 %v194_v54, 16 }
  0x1d   : > { %v228_v2 = vrot.slane %v226_v57, 5  ;;  %v289_v3 = vrot.slane %v287_v58, 4  ;;  %v285_v8 = vsel %vm822_vm2, %v280_v50, %v284_v60  ;;  %v838_v9 = vunpack.c.l.b16 %v271_v63  ;;  %v197_v50 = vld [vmem:[%s772_s17 + $0x40] sm:$0xf] }
  0x1e   : > { %v215_v10 = vsel %vm822_vm2, %v210_v52, %v214_v61  ;;  %v292_v11 = vrot.slane %v290_v62, 5  ;;  %v250_v13 = vrot.slane %v248_v34, 5  ;;  %v843_v15 = vunpack.c.l.b16 %v285_v8 }
  0x1f   : > { %v229_v16 = vsel %vm822_vm2, %v224_v56, %v228_v2  ;;  %v348_v17 = vunpack.c.l.b16 %v215_v10  ;;  %v298_v21 = vrot.slane %v296_v7, 5  ;;  %v301_v22 = vshrl.u32 %v834_v4, 16 }
  0x20   : > { %390 = vrot.lane.b32.xlu0 %v386_v42, %s734_s19  ;;  %v849_v19 = vunpack.c.l.b16 %v229_v16  ;;  %v293_v20 = vor.u32 %v292_v11, %v289_v3  ;;  %v358_v23 = vpack.c.b16 %v843_v15, %v838_v9  ;;  %v304_v25 = vshll.u32 %v834_v4, 16 }
  0x21   : > { %v310_v26 = vshll.u32 %v196_v12, 16  ;;  %v237_v29 = vor.u32 %v236_v59, %v233_v46  ;;  %v303_v32 = vrot.slane %v301_v22, 4  ;;  %v240_v33 = vshll.u32 %v186_v18, 16 }
  0x22   : > { %v356_v30 = vpack.c.b16 %v849_v19, %v348_v17  ;;  %v294_v31 = vrot.slane %v293_v20, 4  ;;  %v306_v34 = vrot.slane %v304_v25, 5  ;;  %v251_v37 = vor.u32 %v250_v13, %v810_v40 }
  0x23   : > { %v238_v36 = vrot.slane %v237_v29, 4  ;;  %v342_v38 = vunpack.c.l.b16 %v814_v44  ;;  %v242_v39 = vrot.slane %v240_v33, 5  ;;  %v254_v41 = vshll.u32 %v188_v27, 16 }
  0x24   : > { %364 = vrot.lane.b32.xlu1 %v358_v23, %s735_s20  ;;  %376 = vrot.lane.b32.xlu2 %v356_v30, %s736_s21  ;;  %v299_v42 = vsel %vm822_vm2, %v294_v31, %v298_v21  ;;  %v307_v43 = vor.u32 %v306_v34, %v303_v32  ;;  %v312_v46 = vrot.slane %v310_v26, 5  ;;  %v252_v47 = vrot.slane %v251_v37, 4 }
  0x25   : > { %v243_v48 = vsel %vm822_vm2, %v238_v36, %v242_v39  ;;  %v256_v40 = vrot.slane %v254_v41, 5  ;;  %v388_v44 = vpack.c.b16 %v342_v38, %v341_v6  ;;  %v354_v53 = vunpack.c.l.b16 %v299_v42  ;;  %v198_v6 = vld [vmem:[%s772_s17 + $0x44] sm:$0x1] }
  0x26   : > { %v308_v51 = vrot.slane %v307_v43, 4  ;;  %v350_v52 = vunpack.c.l.b16 %v243_v48  ;;  %v315_v57 = vshrl.u32 %v197_v50, 16  ;;  %v318_v58 = vshll.u32 %v197_v50, 16 }
  0x27   : > { %v257_v54 = vsel %vm822_vm2, %v252_v47, %v256_v40  ;;  %v343_v63 = vunpack.c.l.b16 %v834_v4  ;;  %v324_v3 = vshll.u32 %v198_v6, 16  ;;  %v401_v4 = vpack.c.b16 %v354_v53, %v843_v15 }
  0x28   : > { %360 = vrot.lane.b32.xlu0 %v356_v30, %s735_s20  ;;  %v313_v55 = vsel %vm822_vm2, %v308_v51, %v312_v46  ;;  %v351_v56 = vunpack.c.l.b16 %v257_v54  ;;  %v317_v62 = vrot.slane %v315_v57, 4  ;;  %v320_v1 = vrot.slane %v318_v58, 5 }
  0x29   : > { %v355_v59 = vunpack.c.l.b16 %v313_v55  ;;  %v879_v7 = vpack.c.b16 %v343_v63, %v342_v38  ;;  %v326_v10 = vrot.slane %v324_v3, 5  ;;  %v399_v11 = vpack.c.b16 %v350_v52, %v849_v19  ;;  %v474_v19 = vld [vmem:[%s993_s1 + $0x10] sm:$0x3] }
  0x2a   : > { %v357_v60 = vpack.c.b16 %v351_v56, %v350_v52  ;;  %v321_v2 = vor.u32 %v320_v1, %v317_v62  ;;  %v387_v17 = vpack.c.b16 %v340_v5, %v339_v35  ;;  %v400_v49 = vpack.c.b16 %v838_v9, %v351_v56  ;;  %v701_v35 = vld [vmem:[%s993_s1 + $0x8] sm:$0xff]  ;;  %v700_v9 = vld [vmem:[%s993_s1] sm:$0xff] }
  0x2b   : > { %v359_v61 = vpack.c.b16 %v355_v59, %v354_v53  ;;  %v385_v18 = vunpack.c.l.b16 %v197_v50  ;;  %v484_v24 = vunpack.c.l.b16 %v474_v19 }
  0x2c   : > { %394 = vrot.lane.b32.xlu1 %v388_v44, %s734_s19  ;;  %362 = vrot.lane.b32.xlu2 %v357_v60, %s735_s20  ;;  %v322_v8 = vrot.slane %v321_v2, 4 }
  0x2d   : > { %v389_v15 = vpack.c.b16 %v385_v18, %v343_v63  ;;  %v487_v0 = vpack.c.b16 %v484_v24, %v484_v24 }
  0x2e   : > { %v327_v12 = vsel %vm822_vm2, %v322_v8, %v326_v10 }
  0x2f   : > { %v398_v13 = vunpack.c.l.b16 %v327_v12  ;;  %v501_v5 = vsel %vm499_vm3, %v487_v0, 0 }
  0x30   : > { %366 = vrot.lane.b32.xlu0 %v359_v61, %s735_s20  ;;  %508 = vmatpush.bf16.msra.mxu0 %v501_v5 }
  0x31   : > { %v402_v16 = vpack.c.b16 %v398_v13, %v355_v59  ;;  %703 = vmatpush.bf16.msra.mxu2 %v501_v5  ;;  %702 = vmatpush.bf16.msra.mxu1 %v501_v5 }
  0x32   : > { %704 = vmatpush.bf16.msra.mxu3 %v501_v5 }
  0x34   : > { %378 = vrot.lane.b32.xlu1 %v357_v60, %s736_s21  ;;  %380 = vrot.lane.b32.xlu2 %v358_v23, %s736_s21 }
  0x35   : > { %509 = vmatpush.bf16.msra.mxu0 %v701_v35  ;;  %706 = vmatpush.bf16.msra.mxu2 %v701_v35 }
  0x36   : > { %705 = vmatpush.bf16.msra.mxu1 %v701_v35  ;;  %707 = vmatpush.bf16.msra.mxu3 %v701_v35 }
  0x38   : > { %374 = vrot.lane.b32.xlu0 %v879_v7, %s733_s18 }
  0x39   : > { %510 = vmatpush.bf16.msra.mxu0 %v700_v9  ;;  %709 = vmatpush.bf16.msra.mxu2 %v700_v9 }
  0x3a   : > { %708 = vmatpush.bf16.msra.mxu1 %v700_v9  ;;  %710 = vmatpush.bf16.msra.mxu3 %v700_v9 }
  0x3c   : > { %382 = vrot.lane.b32.xlu1 %v359_v61, %s736_s21  ;;  %403 = vrot.lane.b32.xlu2 %v399_v11, %s737_s22 }
  0x40   : > { %407 = vrot.lane.b32.xlu0 %v401_v4, %s737_s22 }
  0x44   : > { %409 = vrot.lane.b32.xlu1 %v402_v16, %s737_s22  ;;  %392 = vrot.lane.b32.xlu2 %v387_v17, %s734_s19 }
  0x48   : > { %405 = vrot.lane.b32.xlu0 %v400_v49, %s737_s22 }
  0x4c   : > { %396 = vrot.lane.b32.xlu2 %v389_v15, %s734_s19 }
  0x7e   : > { %v377_v20 = vpop.permute.xlu2 %376 }
  0x86   : > { %v373_v21 = vpop.permute.xlu1 %372  ;;  %v363_v23 = vpop.permute.xlu2 %362 }
  0x87   : > { %v419_v52 = vsel %vm415_vm4, %v818_v45, %v363_v23 }
  0x8a   : > { %v369_v22 = vpop.permute.xlu0 %368 }
  0x8e   : > { %v371_v25 = vpop.permute.xlu1 %370  ;;  %v381_v27 = vpop.permute.xlu2 %380 }
  0x8f   : > { %v428_v55 = vsel %vm424_vm5, %v419_v52, %v371_v25 }
  0x90   : > { %v435_v60 = vsel %vm433_vm7, %v428_v55, %v371_v25 }
  0x92   : > { %v391_v26 = vpop.permute.xlu0 %390 }
  0x96   : > { %v365_v29 = vpop.permute.xlu1 %364  ;;  %v404_v34 = vpop.permute.xlu2 %403 }
  0x97   : > { %v421_v42 = vsel %vm415_vm4, %v792_v14, %v365_v29 }
  0x98   : > { %v430_v47 = vsel %vm424_vm5, %v421_v42, %v373_v21 }
  0x99   : > { %v436_v40 = vsel %vm433_vm7, %v430_v47, %v373_v21 }
  0x9a   : > { %v361_v30 = vpop.permute.xlu0 %360  ;;  %v444_v44 = vsel %vm438_vm6, %v436_v40, %v381_v27 }
  0x9b   : > { %v417_v31 = vsel %vm415_vm4, %v801_v28, %v361_v30 }
  0x9c   : > { %v426_v32 = vsel %vm424_vm5, %v417_v31, %v369_v22 }
  0x9d   : > { %v434_v33 = vsel %vm433_vm7, %v426_v32, %v369_v22 }
  0x9e   : > { %v395_v36 = vpop.permute.xlu1 %394  ;;  %v440_v37 = vsel %vm438_vm6, %v434_v33, %v377_v20  ;;  %v393_v46 = vpop.permute.xlu2 %392 }
  0x9f   : > { %v449_v38 = vsel %vm447_vm8, %v440_v37, %v391_v26  ;;  %v453_v14 = vsel %vm447_vm8, %v444_v44, %v395_v36 }
  0xa0   : > { %v457_v39 = vsel %vm456_vm9, %v449_v38, %v391_v26  ;;  %v459_v58 = vsel %vm456_vm9, %v453_v14, %v395_v36 }
  0xa1   : > { %v463_v28 = vsel %vm461_vm10, %v457_v39, %v404_v34 }
  0xa2   : > { %693 = vmatmul.msk.bf16.vlgmr.msra.gmra.mxu0 %vm490_vm11, %v463_v28  ;;  %v367_v41 = vpop.permute.xlu0 %366 }
  0xa3   : > { %v423_v50 = vsel %vm415_vm4, %v879_v7, %v367_v41 }
  0xa6   : > { %v379_v43 = vpop.permute.xlu1 %378  ;;  %v397_v57 = vpop.permute.xlu2 %396 }
  0xa7   : > { %v442_v62 = vsel %vm438_vm6, %v435_v60, %v379_v43 }
  0xa8   : > { %v451_v63 = vsel %vm447_vm8, %v442_v62, %v393_v46 }
  0xa9   : > { %v458_v3 = vsel %vm456_vm9, %v451_v63, %v393_v46 }
  0xaa   : > { %v375_v48 = vpop.permute.xlu0 %374 }
  0xab   : > { %v432_v51 = vsel %vm424_vm5, %v423_v50, %v375_v48 }
  0xac   : > { %v437_v54 = vsel %vm433_vm7, %v432_v51, %v375_v48 }
  0xae   : > { %v383_v53 = vpop.permute.xlu1 %382 }
  0xaf   : > { %v446_v56 = vsel %vm438_vm6, %v437_v54, %v383_v53 }
  0xb0   : > { %v455_v45 = vsel %vm447_vm8, %v446_v56, %v397_v57 }
  0xb1   : > { %v460_v1 = vsel %vm456_vm9, %v455_v45, %v397_v57 }
  0xb2   : > { %v408_v59 = vpop.permute.xlu0 %407 }
  0xb3   : > { %v467_v61 = vsel %vm461_vm10, %v459_v58, %v408_v59 }
  0xb4   : > { %695 = vmatmul.msk.bf16.vlgmr.msra.gmra.mxu2 %vm490_vm11, %v467_v61 }
  0xb6   : > { %v410_v6 = vpop.permute.xlu1 %409 }
  0xb7   : > { %v469_v2 = vsel %vm461_vm10, %v460_v1, %v410_v6 }
  0xb8   : > { %696 = vmatmul.msk.bf16.vlgmr.msra.gmra.mxu3 %vm490_vm11, %v469_v2 }
  0xba   : > { %v406_v7 = vpop.permute.xlu0 %405 }
  0xbb   : > { %v465_v8 = vsel %vm461_vm10, %v458_v3, %v406_v7 }
  0xbc   : > { %694 = vmatmul.msk.bf16.vlgmr.msra.gmra.mxu1 %vm490_vm11, %v465_v8 }
 0x11f   : > { %v512_v10 = vpop.f32.mrf.mxu0 }
 0x120   : > { %532 = vst.msk [vmem:[%s949_s5] sm:$0xff] %vm461_vm10, %v512_v10  ;;  %v540_v12 = vsel %vm461_vm10, %v512_v10, 0.0  ;;  %v561_v24 = vmul.f32 %v512_v10, %v512_v10 }
 0x122   : > { %v569_v9 = vsel %vm461_vm10, %v561_v24, 0.0 }
 0x127   : > { %v514_v11 = vpop.f32.mrf.mxu0 }
 0x128   : > { %533 = vst.msk [vmem:[%s949_s5 + $0x8] sm:$0xff] %vm461_vm10, %v514_v11  ;;  %v541_v4 = vsel %vm461_vm10, %v514_v11, 0.0  ;;  %v562_v49 = vmul.f32 %v514_v11, %v514_v11 }
 0x129   : > { %v542_v13 = vadd.f32 %v541_v4, %v540_v12 }
 0x12a   : > { %v570_v5 = vsel %vm461_vm10, %v562_v49, 0.0 }
 0x12b   : > { %v571_v21 = vadd.f32 %v570_v5, %v569_v9 }
 0x137   : > { %v522_v16 = vpop.f32.mrf.mxu2 }
 0x138   : > { %536 = vst.msk [vmem:[%s949_s5 + $0x20] sm:$0xff] %vm461_vm10, %v522_v16  ;;  %v565_v23 = vmul.f32 %v522_v16, %v522_v16  ;;  %v547_v31 = vsel %vm461_vm10, %v522_v16, 0.0 }
 0x139   : > { %v517_v17 = vpop.f32.mrf.mxu1 }
 0x13a   : > { %534 = vst.msk [vmem:[%s949_s5 + $0x10] sm:$0xff] %vm461_vm10, %v517_v17  ;;  %v543_v18 = vsel %vm461_vm10, %v517_v17, 0.0  ;;  %v563_v0 = vmul.f32 %v517_v17, %v517_v17  ;;  %v576_v37 = vsel %vm461_vm10, %v565_v23, 0.0 }
 0x13b   : > { %v544_v15 = vadd.f32 %v543_v18, %v542_v13  ;;  %v527_v19 = vpop.f32.mrf.mxu3 }
 0x13c   : > { %538 = vst.msk [vmem:[%s949_s5 + $0x30] sm:$0xff] %vm461_vm10, %v527_v19  ;;  %v572_v20 = vsel %vm461_vm10, %v563_v0, 0.0  ;;  %v567_v39 = vmul.f32 %v527_v19, %v527_v19  ;;  %v551_v43 = vsel %vm461_vm10, %v527_v19, 0.0 }
 0x13d   : > { %v573_v27 = vadd.f32 %v572_v20, %v571_v21 }
 0x13e   : > { %v580_v40 = vsel %vm461_vm10, %v567_v39, 0.0 }
 0x13f   : > { %v524_v35 = vpop.f32.mrf.mxu2 }
 0x140   : > { %537 = vst.msk [vmem:[%s949_s5 + $0x28] sm:$0xff] %vm461_vm10, %v524_v35  ;;  %v566_v32 = vmul.f32 %v524_v35, %v524_v35  ;;  %v549_v38 = vsel %vm461_vm10, %v524_v35, 0.0 }
 0x141   : > { %v519_v22 = vpop.f32.mrf.mxu1 }
 0x142   : > { %535 = vst.msk [vmem:[%s949_s5 + $0x18] sm:$0xff] %vm461_vm10, %v519_v22  ;;  %v545_v25 = vsel %vm461_vm10, %v519_v22, 0.0  ;;  %v564_v26 = vmul.f32 %v519_v22, %v519_v22  ;;  %v578_v42 = vsel %vm461_vm10, %v566_v32, 0.0 }
 0x143   : > { %v546_v29 = vadd.f32 %v545_v25, %v544_v15  ;;  %v529_v30 = vpop.f32.mrf.mxu3 }
 0x144   : > { %v574_v33 = vsel %vm461_vm10, %v564_v26, 0.0  ;;  %539 = vst.msk [vmem:[%s949_s5 + $0x38] sm:$0xff] %vm461_vm10, %v529_v30  ;;  %v568_v46 = vmul.f32 %v529_v30, %v529_v30  ;;  %v553_v50 = vsel %vm461_vm10, %v529_v30, 0.0 }
 0x145   : > { %v548_v34 = vadd.f32 %v547_v31, %v546_v29  ;;  %v575_v36 = vadd.f32 %v574_v33, %v573_v27 }
 0x146   : > { %v582_v44 = vsel %vm461_vm10, %v568_v46, 0.0 }
 0x147   : > { %v577_v28 = vadd.f32 %v576_v37, %v575_v36  ;;  %v550_v41 = vadd.f32 %v549_v38, %v548_v34 }
 0x149   : > { %v552_v47 = vadd.f32 %v551_v43, %v550_v41  ;;  %v579_v48 = vadd.f32 %v578_v42, %v577_v28 }
 0x14b   : > { %v554_v51 = vadd.f32 %v553_v50, %v552_v47  ;;  %v581_v52 = vadd.f32 %v580_v40, %v579_v48 }
 0x14d   : > { %v583_v53 = vadd.f32 %v582_v44, %v581_v52  ;;  %v555_v59 = vrot.slane %v554_v51, 4 }
 0x14f   : > { %v584_v14 = vrot.slane %v583_v53, 4  ;;  %v556_v60 = vadd.f32 %v555_v59, %v554_v51 }
 0x151   : > { %v585_v54 = vadd.f32 %v584_v14, %v583_v53  ;;  %v557_v45 = vrot.slane %v556_v60, 2 }
 0x153   : > { %v586_v55 = vrot.slane %v585_v54, 2  ;;  %v558_v61 = vadd.f32 %v557_v45, %v556_v60 }
 0x155   : > { %v587_v56 = vadd.f32 %v586_v55, %v585_v54  ;;  %v559_v62 = vrot.slane %v558_v61, 1 }
 0x157   : > { %v588_v57 = vrot.slane %v587_v56, 1  ;;  %v560_v1 = vadd.f32 %v559_v62, %v558_v61 }
 0x159   : > { %v589_v58 = vadd.f32 %v588_v57, %v587_v56 }
 0x15b   : > { %591 = vrot.lane.b32.xlu2 %v589_v58, %s737_s22 }
 0x1b5   : > { %v592_v6 = vpop.permute.xlu2 %591 }
 0x1b6   : > { %v594_v63 = vsel %vm461_vm10, %v560_v1, %v592_v6 }
 0x1b7   : > { %596 = vst.msk [vmem:[%s179_s8] sm:$0x1] %vm595_vm12, %v594_v63 }
 0x1b8 PF: > { %s14_s12 = sadd.s32 1, %s731_s12  }
 0x1b9   : > { %p11_p4 = scmp.ge.s32.totalorder %s14_s12, 4  }
 0x1bb   :  { %13 = sbr.rel (!%p11_p4) target bundleno = 1 (0x1), region = 70 }

// kernel: confidence_scorer_2d.4
= control target key start
LH: loop header
LB: loop body
LE: loop exit
PB: predicated region body
PF: predicated region fallthrough
CT: control target
= control target key end

     0   :  { %s854_s12 = smov 0   ;;  %s1047_s0 = inlined_call_operand.vmem [shape: bf16[2,5,5,128], index: 0, kind: input, shape index: {}]   ;;  %s1048_s1 = inlined_call_operand.vmem [shape: bf16[288,32], index: 1, kind: input, shape index: {}]   ;;  %s1049_s2 = inlined_call_operand.vmem [shape: f32[2,16,32], index: 2, kind: output, shape index: {0}]   ;;  %s1050_s3 = inlined_call_operand.vmem [shape: f32[2,1,64], index: 3, kind: output, shape index: {1}]  }
   0x1 LB: > { %s709_s13 = sadd.s32 4294967295, %s829_s12   ;;  %p713_p0 = scmp.ge.s32.totalorder %s829_s12, 1  ;;  %s829_s12 = sphi %s854_s12, %s14_s12  }
   0x2   : > { %p140_p1 = scmp.lt.s32.totalorder %s829_s12, 3 }
   0x4   : > { %p141_p2 = pnand %p713_p0, %p140_p1 }
   0x5   : > { %p167_p3 = scmp.lt.s32.totalorder (!%p141_p2), %s709_s13, 1  ;;  %s831_s18 = smov (!%p141_p2), 64  }
   0x6   : > { %144 = sbr.rel (%p141_p2) target bundleno = 483 (0x1e3), region = 28  ;;  %s832_s19 = smov (!%p141_p2), 32  }
   0x7   : > { %s833_s5 = smov (!%p141_p2), 96  }
   0xb   : > { %s1054_s13 = smov (!%p167_p3, %s709_s13), 1  ;;  %vm194_vm0 = vcmask 1041408   ;;  %vm198_vm1 = vcmask 1043458   ;;  %vm220_vm2 = vsmask.f32 1280  ;;  %vm395_vm9 = vcmask 261120  }
   0xc   : > { %s811_s14 = smul.u32 20, %s1054_s13  ;;  %vm221_vm3 = vsmask.f32 3336  ;;  %vm223_vm4 = vsmask.f32 5392  ;;  %vm397_vm10 = vcmask 523264  }
   0xd   : > { %vm222_vm5 = vmor %vm220_vm2, %vm221_vm3  ;;  %vm225_vm7 = vsmask.f32 7448  ;;  %vm400_vm11 = vcmask 785408   ;;  %s792_s6 = sshll.u32 %s1054_s13, 4  ;;  %vm627_vm12 = vcmask 516096  }
   0xe   : > { %s868_s17 = scalar_lea.vmem %s1047_s0, %s811_s14  ;;  %vm224_vm6 = vmor %vm222_vm5, %vm223_vm4  ;;  %s176_s9 = scalar_lea.vmem %s1049_s2, %s792_s6 }
   0xf   : > { %v871_v0 = vld [vmem:[%s868_s17] sm:$0x7]  ;;  %v874_v1 = vld [vmem:[%s868_s17 + $0x4] sm:$0x7]  ;;  %v877_v2 = vld [vmem:[%s868_s17 + $0x8] sm:$0x7]  ;;  %s179_s14 = scalar_lea.vmem %s1050_s3, %s1054_s13 }
  0x10   : > { %v190_v3 = vrot.slane %v871_v0, 2  ;;  %v191_v4 = vrot.slane %v874_v1, 2  ;;  %v192_v5 = vrot.slane %v877_v2, 2  ;;  %v883_v6 = vld [vmem:[%s868_s17 + $0xc] sm:$0x7]  ;;  %vm914_vm8 = vmor %vm224_vm6, %vm225_vm7 }
  0x11   : > { %300 = vst [vmem:[#allocation1] ss:$4 sm:$0xff] %v871_v0  ;;  %v193_v7 = vrot.slane %v883_v6, 2  ;;  %v185_v61 = vld [vmem:[%s868_s17 + $0x10] sm:$0x7] }
  0x12   : > { %v197_v8 = vsel %vm194_vm0, %v871_v0, %v190_v3  ;;  %v204_v9 = vsel %vm194_vm0, %v874_v1, %v191_v4  ;;  %302 = vst [vmem:[#allocation1 + $0x1] ss:$4 sm:$0xff] %v874_v1  ;;  %v210_v10 = vsel %vm194_vm0, %v877_v2, %v192_v5  ;;  %v199_v11 = vsel %vm198_vm1, %v871_v0, %v190_v3 }
  0x13   : > { %304 = vst [vmem:[#allocation1 + $0x2] ss:$4 sm:$0xff] %v877_v2  ;;  %v227_v12 = vshrl.u32 %v197_v8, 16  ;;  %v205_v13 = vsel %vm198_vm1, %v874_v1, %v191_v4  ;;  %v230_v14 = vshll.u32 %v197_v8, 16  ;;  %v240_v15 = vshrl.u32 %v204_v9, 16 }
  0x14   : > { %306 = vst [vmem:[#allocation1 + $0x3] ss:$4 sm:$0xff] %v883_v6  ;;  %v216_v16 = vsel %vm194_vm0, %v883_v6, %v193_v7  ;;  %v243_v17 = vshll.u32 %v204_v9, 16  ;;  %v253_v18 = vshrl.u32 %v210_v10, 16  ;;  %v201_v19 = vrot.slane %v199_v11, 2 }
  0x15   : > { %v211_v20 = vsel %vm198_vm1, %v877_v2, %v192_v5  ;;  %v256_v21 = vshll.u32 %v210_v10, 16  ;;  %v207_v22 = vrot.slane %v205_v13, 2  ;;  %v217_v23 = vsel %vm198_vm1, %v883_v6, %v193_v7 }
  0x16   : > { %v229_v24 = vrot.slane %v227_v12, 6  ;;  %v232_v25 = vrot.slane %v230_v14, 7  ;;  %v242_v26 = vrot.slane %v240_v15, 6  ;;  %v245_v27 = vrot.slane %v243_v17, 7  ;;  %v800_v15 = vld [vmem:[%s1048_s1 + $0x38] sm:$0xff]  ;;  %v799_v17 = vld [vmem:[%s1048_s1 + $0x30] sm:$0xff] }
  0x17   : > { %v266_v28 = vshrl.u32 %v216_v16, 16  ;;  %v269_v29 = vshll.u32 %v216_v16, 16  ;;  %v213_v30 = vrot.slane %v211_v20, 2  ;;  %v255_v31 = vrot.slane %v253_v18, 6  ;;  %v808_v16 = vld [vmem:[%s1048_s1 + $0x78] sm:$0xff]  ;;  %558 = vmatpush.bf16.msra.mxu0 %v800_v15  ;;  %v807_v18 = vld [vmem:[%s1048_s1 + $0x70] sm:$0xff] }
  0x18   : > { %v258_v32 = vrot.slane %v256_v21, 7  ;;  %v219_v33 = vrot.slane %v217_v23, 2  ;;  %v233_v37 = vor.u32 %v232_v25, %v229_v24  ;;  %v236_v38 = vshll.u32 %v201_v19, 16  ;;  %572 = vmatpush.bf16.msra.mxu1 %v808_v16  ;;  %v810_v19 = vld [vmem:[%s1048_s1 + $0x88] sm:$0xff]  ;;  %v797_v23 = vld [vmem:[%s1048_s1 + $0x20] sm:$0xff]  ;;  %v796_v25 = vld [vmem:[%s1048_s1 + $0x18] sm:$0xff] }
  0x19   : > { %v268_v34 = vrot.slane %v266_v28, 6  ;;  %v271_v35 = vrot.slane %v269_v29, 7  ;;  %v246_v39 = vor.u32 %v245_v27, %v242_v26  ;;  %v249_v40 = vshll.u32 %v207_v22, 16  ;;  %v798_v21 = vld [vmem:[%s1048_s1 + $0x28] sm:$0xff]  ;;  %592 = vmatpush.bf16.msra.mxu2 %v810_v19  ;;  %v805_v24 = vld [vmem:[%s1048_s1 + $0x60] sm:$0xff]  ;;  %v795_v27 = vld [vmem:[%s1048_s1 + $0x10] sm:$0xff] }
  0x1a   : > { %v259_v41 = vor.u32 %v258_v32, %v255_v31  ;;  %v262_v42 = vshll.u32 %v213_v30, 16  ;;  %v275_v44 = vshll.u32 %v219_v33, 16  ;;  %v234_v45 = vrot.slane %v233_v37, 2  ;;  %v806_v22 = vld [vmem:[%s1048_s1 + $0x68] sm:$0xff]  ;;  %v803_v31 = vld [vmem:[%s1048_s1 + $0x50] sm:$0xff] }
  0x1b   : > { %v908_v36 = vld.sshfl [vmem:[#allocation1] sm:$0xff pattern:$0x73625140]  ;;  %v272_v43 = vor.u32 %v271_v35, %v268_v34  ;;  %v238_v46 = vrot.slane %v236_v38, 7  ;;  %v247_v48 = vrot.slane %v246_v39, 2  ;;  %v251_v49 = vrot.slane %v249_v40, 7  ;;  %559 = vmatpush.bf16.msra.mxu0 %v799_v17 }
  0x1c   : > { %308 = vst [vmem:[#allocation1] ss:$4 sm:$0xff] %v871_v0  ;;  %v260_v50 = vrot.slane %v259_v41, 2  ;;  %v264_v51 = vrot.slane %v262_v42, 7  ;;  %v277_v53 = vrot.slane %v275_v44, 7  ;;  %v280_v62 = vrot.slane %v185_v61, 2  ;;  %573 = vmatpush.bf16.msra.mxu1 %v807_v18 }
  0x1d   : > { %310 = vst [vmem:[#allocation1 + $0x1] ss:$4 sm:$0xff] %v874_v1  ;;  %v273_v52 = vrot.slane %v272_v43, 2  ;;  %v239_v54 = vsel %vm914_vm8, %v234_v45, %v238_v46  ;;  %v922_v55 = vsel %vm914_vm8, %v247_v48, %v251_v49  ;;  %v794_v28 = vld [vmem:[%s1048_s1 + $0x8] sm:$0xff]  ;;  %v801_v39 = vld [vmem:[%s1048_s1 + $0x40] sm:$0xff] }
  0x1e   : > { %312 = vst [vmem:[#allocation1 + $0x2] ss:$4 sm:$0xff] %v877_v2  ;;  %v926_v56 = vsel %vm914_vm8, %v260_v50, %v264_v51  ;;  %v283_v63 = vsel %vm194_vm0, %v185_v61, %v280_v62  ;;  %v284_v3 = vsel %vm198_vm1, %v185_v61, %v280_v62  ;;  %v802_v38 = vld [vmem:[%s1048_s1 + $0x48] sm:$0xff] }
  0x1f   : > { %314 = vst [vmem:[#allocation1 + $0x3] ss:$4 sm:$0xff] %v883_v6  ;;  %v932_v58 = vsel %vm914_vm8, %v273_v52, %v277_v53  ;;  %v286_v4 = vrot.slane %v284_v3, 2  ;;  %v287_v5 = vshrl.u32 %v283_v63, 16  ;;  %v290_v7 = vshll.u32 %v283_v63, 16  ;;  %560 = vmatpush.bf16.msra.mxu0 %v798_v21 }
  0x20   : > { %574 = vmatpush.bf16.msra.mxu1 %v806_v22 }
  0x21   : > { %v289_v8 = vrot.slane %v287_v5, 6  ;;  %v296_v9 = vshll.u32 %v286_v4, 16 }
  0x23   : > { %v298_v12 = vrot.slane %v296_v9, 7  ;;  %561 = vmatpush.bf16.msra.mxu0 %v797_v23 }
  0x24   : > { %575 = vmatpush.bf16.msra.mxu1 %v805_v24 }
  0x26   : > { %v928_v57 = vld.sshfl [vmem:[#allocation1] sm:$0xff pattern:$0x73625140] }
  0x27   : > { %317 = vst [vmem:[#allocation1] ss:$4 sm:$0xff] %v239_v54  ;;  %562 = vmatpush.bf16.msra.mxu0 %v796_v25  ;;  %v396_v32 = vsel %vm395_vm9, %v908_v36, %v928_v57 }
  0x28   : > { %320 = vst [vmem:[#allocation1 + $0x1] ss:$4 sm:$0xff] %v922_v55 }
  0x29   : > { %323 = vst [vmem:[#allocation1 + $0x2] ss:$4 sm:$0xff] %v926_v56 }
  0x2a   : > { %326 = vst [vmem:[#allocation1 + $0x3] ss:$4 sm:$0xff] %v932_v58 }
  0x2b   : > { %563 = vmatpush.bf16.msra.mxu0 %v795_v27 }
  0x2f   : > { %564 = vmatpush.bf16.msra.mxu0 %v794_v28 }
  0x31   : > { %v327_v59 = vld.sshfl [vmem:[#allocation1] sm:$0xff pattern:$0x73625140] }
  0x32   : > { %329 = vrot.lane.b32.xlu1 %v327_v59, %s831_s18  ;;  %331 = vst [vmem:[#allocation1] ss:$4 sm:$0xff] %v871_v0 }
  0x33   : > { %333 = vst [vmem:[#allocation1 + $0x1] ss:$4 sm:$0xff] %v874_v1 }
  0x34   : > { %335 = vst [vmem:[#allocation1 + $0x2] ss:$4 sm:$0xff] %v877_v2 }
  0x35   : > { %337 = vst [vmem:[#allocation1 + $0x3] ss:$4 sm:$0xff] %v883_v6 }
  0x3c   : > { %v338_v60 = vld.sshfl [vmem:[#allocation1] sm:$0xff pattern:$0x73625140] }
  0x3d   : > { %342 = vst [vmem:[#allocation1] ss:$4 sm:$0xff] %v871_v0  ;;  %340 = vrot.lane.b32.xlu2 %v338_v60, %s832_s19  ;;  %v292_v0 = vrot.slane %v290_v7, 7 }
  0x3e   : > { %344 = vst [vmem:[#allocation1 + $0x1] ss:$4 sm:$0xff] %v874_v1 }
  0x3f   : > { %346 = vst [vmem:[#allocation1 + $0x2] ss:$4 sm:$0xff] %v877_v2  ;;  %v293_v11 = vor.u32 %v292_v0, %v289_v8 }
  0x40   : > { %348 = vst [vmem:[#allocation1 + $0x3] ss:$4 sm:$0xff] %v883_v6 }
  0x41   : > { %v294_v13 = vrot.slane %v293_v11, 2 }
  0x43   : > { %v299_v14 = vsel %vm914_vm8, %v294_v13, %v298_v12 }
  0x47   : > { %v349_v10 = vld.sshfl [vmem:[#allocation1] sm:$0xff pattern:$0x73625140] }
  0x48   : > { %351 = vrot.lane.b32.xlu0 %v349_v10, %s832_s19  ;;  %353 = vst [vmem:[#allocation1] ss:$4 sm:$0xff] %v239_v54 }
  0x49   : > { %355 = vst [vmem:[#allocation1 + $0x1] ss:$4 sm:$0xff] %v922_v55 }
  0x4a   : > { %357 = vst [vmem:[#allocation1 + $0x2] ss:$4 sm:$0xff] %v926_v56 }
  0x4b   : > { %359 = vst [vmem:[#allocation1 + $0x3] ss:$4 sm:$0xff] %v932_v58 }
  0x52   : > { %v360_v20 = vld.sshfl [vmem:[#allocation1] sm:$0xff pattern:$0x73625140] }
  0x53   : > { %362 = vrot.lane.b32.xlu0 %v360_v20, %s833_s5  ;;  %364 = vst [vmem:[#allocation1] ss:$4 sm:$0xff] %v874_v1 }
  0x54   : > { %366 = vst [vmem:[#allocation1 + $0x1] ss:$4 sm:$0xff] %v877_v2 }
  0x55   : > { %368 = vst [vmem:[#allocation1 + $0x2] ss:$4 sm:$0xff] %v883_v6 }
  0x56   : > { %370 = vst [vmem:[#allocation1 + $0x3] ss:$4 sm:$0xff] %v185_v61 }
  0x5d   : > { %v371_v26 = vld.sshfl [vmem:[#allocation1] sm:$0xff pattern:$0x73625140] }
  0x5e   : > { %373 = vrot.lane.b32.xlu1 %v371_v26, %s831_s18  ;;  %375 = vst [vmem:[#allocation1] ss:$4 sm:$0xff] %v874_v1  ;;  %v793_v1 = vld [vmem:[%s1048_s1] sm:$0xff] }
  0x5f   : > { %377 = vst [vmem:[#allocation1 + $0x1] ss:$4 sm:$0xff] %v877_v2  ;;  %565 = vmatpush.bf16.msra.mxu0 %v793_v1  ;;  %v804_v2 = vld [vmem:[%s1048_s1 + $0x58] sm:$0xff] }
  0x60   : > { %379 = vst [vmem:[#allocation1 + $0x2] ss:$4 sm:$0xff] %v883_v6  ;;  %v809_v6 = vld [vmem:[%s1048_s1 + $0x80] sm:$0xff]  ;;  %576 = vmatpush.bf16.msra.mxu1 %v804_v2 }
  0x61   : > { %381 = vst [vmem:[#allocation1 + $0x3] ss:$4 sm:$0xff] %v185_v61  ;;  %593 = vmatpush.bf16.msra.mxu2 %v809_v6 }
  0x64   : > { %577 = vmatpush.bf16.msra.mxu1 %v803_v31 }
  0x68   : > { %v382_v29 = vld.sshfl [vmem:[#allocation1] sm:$0xff pattern:$0x73625140]  ;;  %578 = vmatpush.bf16.msra.mxu1 %v802_v38 }
  0x69   : > { %384 = vrot.lane.b32.xlu2 %v382_v29, %s831_s18  ;;  %386 = vst [vmem:[#allocation1] ss:$4 sm:$0xff] %v922_v55 }
  0x6a   : > { %388 = vst [vmem:[#allocation1 + $0x1] ss:$4 sm:$0xff] %v926_v56 }
  0x6b   : > { %390 = vst [vmem:[#allocation1 + $0x2] ss:$4 sm:$0xff] %v932_v58 }
  0x6c   : > { %393 = vst [vmem:[#allocation1 + $0x3] ss:$4 sm:$0xff] %v299_v14  ;;  %579 = vmatpush.bf16.msra.mxu1 %v801_v39 }
  0x73   : > { %v394_v30 = vld.sshfl [vmem:[#allocation1] sm:$0xff pattern:$0x73625140] }
  0x74   : > { %789 = vmatmul.msk.bf16.vlgmr.msra.gmra.mxu2 %vm395_vm9, %v394_v30 }
  0x97   : > { %v341_v33 = vpop.permute.xlu2 %340 }
  0xa4   : > { %v330_v34 = vpop.permute.xlu1 %329 }
  0xa5   : > { %v399_v35 = vsel %vm397_vm10, %v396_v32, %v330_v34 }
  0xa6   : > { %v402_v37 = vsel %vm400_vm11, %v399_v35, %v341_v33 }
  0xa7   : > { %566 = vmatmul.bf16.vlgmr.msra.gmra.mxu0 %v402_v37 }
  0xba   : > { %v352_v36 = vpop.permute.xlu0 %351 }
  0xc3   : > { %v385_v41 = vpop.permute.xlu2 %384 }
  0xc5   : > { %v363_v40 = vpop.permute.xlu0 %362 }
  0xc6   : > { %v406_v42 = vsel %vm395_vm9, %v352_v36, %v363_v40 }
  0xd0   : > { %v374_v43 = vpop.permute.xlu1 %373 }
  0xd1   : > { %v408_v44 = vsel %vm397_vm10, %v406_v42, %v374_v43 }
  0xd2   : > { %v410_v45 = vsel %vm400_vm11, %v408_v44, %v385_v41 }
  0xd3   : > { %580 = vmatmul.bf16.vlgmr.msra.gmra.mxu1 %v410_v45 }
  0xf7   : > { %v595_v47 = vpop.f32.mrf.mxu2 }
  0xff   : > { %v597_v54 = vpop.f32.mrf.mxu2 }
 0x124   : > { %v567_v46 = vpop.f32.mrf.mxu0 }
 0x12c   : > { %v569_v51 = vpop.f32.mrf.mxu0 }
 0x150   : > { %v581_v48 = vpop.f32.mrf.mxu1 }
 0x151   : > { %v582_v49 = vadd.f32 %v581_v48, %v567_v46 }
 0x153   : > { %v596_v50 = vadd.f32 %v595_v47, %v582_v49 }
 0x155   : > { %600 = vst.msk [vmem:[%s176_s9] sm:$0xff] %vm395_vm9, %v596_v50  ;;  %v611_v55 = vmul.f32 %v596_v50, %v596_v50  ;;  %v602_v57 = vsel %vm395_vm9, %v596_v50, 0.0 }
 0x157   : > { %v613_v61 = vsel %vm395_vm9, %v611_v55, 0.0 }
 0x158   : > { %v583_v52 = vpop.f32.mrf.mxu1 }
 0x159   : > { %v584_v53 = vadd.f32 %v583_v52, %v569_v51 }
 0x15b   : > { %v598_v56 = vadd.f32 %v597_v54, %v584_v53 }
 0x15d   : > { %601 = vst.msk [vmem:[%s176_s9 + $0x8] sm:$0xff] %vm395_vm9, %v598_v56  ;;  %v603_v58 = vsel %vm395_vm9, %v598_v56, 0.0  ;;  %v612_v59 = vmul.f32 %v598_v56, %v598_v56 }
 0x15e   : > { %v604_v60 = vadd.f32 %v603_v58, %v602_v57 }
 0x15f   : > { %v614_v62 = vsel %vm395_vm9, %v612_v59, 0.0 }
 0x160   : > { %v615_v63 = vadd.f32 %v614_v62, %v613_v61  ;;  %v605_v9 = vrot.slane %v604_v60, 4 }
 0x162   : > { %v616_v3 = vrot.slane %v615_v63, 4  ;;  %v606_v10 = vadd.f32 %v605_v9, %v604_v60 }
 0x164   : > { %v617_v4 = vadd.f32 %v616_v3, %v615_v63  ;;  %v607_v11 = vrot.slane %v606_v10, 2 }
 0x166   : > { %v618_v5 = vrot.slane %v617_v4, 2  ;;  %v608_v12 = vadd.f32 %v607_v11, %v606_v10 }
 0x168   : > { %v619_v7 = vadd.f32 %v618_v5, %v617_v4  ;;  %v609_v13 = vrot.slane %v608_v12, 1 }
 0x16a   : > { %v620_v8 = vrot.slane %v619_v7, 1  ;;  %v610_v14 = vadd.f32 %v609_v13, %v608_v12 }
 0x16c   : > { %v621_v0 = vadd.f32 %v620_v8, %v619_v7 }
 0x16e   : > { %623 = vrot.lane.b32.xlu0 %v621_v0, %s832_s19 }
 0x1e0   : > { %v624_v15 = vpop.permute.xlu0 %623 }
 0x1e1   : > { %v626_v16 = vsel %vm395_vm9, %v610_v14, %v624_v15 }
 0x1e2   : > { %628 = vst.msk [vmem:[%s179_s14] sm:$0x1] %vm627_vm12, %v626_v16 }
 0x1e3 PF: > { %s14_s12 = sadd.s32 1, %s829_s12  }
 0x1e4   : > { %p11_p4 = scmp.ge.s32.totalorder %s14_s12, 4  }
 0x1e6   :  { %13 = sbr.rel (!%p11_p4) target bundleno = 1 (0x1), region = 97 }

// kernel: confidence_scorer_2d.5
= control target key start
LH: loop header
LB: loop body
LE: loop exit
PB: predicated region body
PF: predicated region fallthrough
CT: control target
= control target key end

     0   :  { %s581_s26 = smov 0   ;;  %s816_s0 = inlined_call_operand.vmem [shape: f32[2,1,512], index: 0, kind: input, shape index: {}]   ;;  %s817_s1 = inlined_call_operand.vmem [shape: f32[1,512], index: 1, kind: input, shape index: {}]   ;;  %s818_s2 = inlined_call_operand.vmem [shape: f32[1,512], index: 2, kind: input, shape index: {}]   ;;  %s819_s3 = inlined_call_operand.vmem [shape: f32[512,32], index: 3, kind: input, shape index: {}]   ;;  %s820_s4 = inlined_call_operand.vmem [shape: f32[1,32], index: 4, kind: input, shape index: {}]   ;;  %s821_s5 = inlined_call_operand.vmem [shape: f32[1,32], index: 5, kind: input, shape index: {}]   ;;  %s822_s6 = inlined_call_operand.<no memory space> [shape: f32[1,1], index: 6, kind: input, shape index: {}]   ;;  %s823_s7 = inlined_call_operand.vmem [shape: f32[2,1,1], index: 7, kind: output, shape index: {}]  }
   0x1   :  { %v12_v0 = vstv %s822_s6 }
   0x2   :  { %13 = vst [vmem:[#allocation2] sm:$0x1] %v12_v0 }
   0x3 LB: > { %s510_s27 = sadd.s32 4294967295, %s536_s26   ;;  %p514_p0 = scmp.ge.s32.totalorder %s536_s26, 1  ;;  %s536_s26 = sphi %s581_s26, %s19_s26  }
   0x4   : > { %p238_p1 = scmp.lt.s32.totalorder %s536_s26, 3 }
   0x6   : > { %p239_p2 = pnand %p514_p0, %p238_p1 }
   0x7   : > { %p645_p3 = scmp.lt.s32.totalorder (!%p239_p2), %s510_s27, 1 }
   0x8   : > { %242 = sbr.rel (%p239_p2) target bundleno = 334 (0x14e), region = 48 }
   0xd   : > { %v327_v1 = vld [vmem:[%s819_s3 + $0x178] sm:$0xff]  ;;  %v326_v3 = vld [vmem:[%s819_s3 + $0x170] sm:$0xff]  ;;  %v325_v7 = vld [vmem:[%s819_s3 + $0x168] sm:$0xff]  ;;  %s826_s27 = smov (!%p645_p3, %s510_s27), 1  ;;  %vm436_vm0 = vcmask 253952   ;;  %vm461_vm4 = vcmask 0  }
   0xe   : > { %v295_v2 = vld [vmem:[%s819_s3 + $0x78] sm:$0xff]  ;;  %394 = vmatpush.msra.mxu2 %v327_v1  ;;  %v294_v5 = vld [vmem:[%s819_s3 + $0x70] sm:$0xff]  ;;  %v293_v9 = vld [vmem:[%s819_s3 + $0x68] sm:$0xff]  ;;  %s515_s30 = sshll.u32 %s826_s27, 2  ;;  %s273_s15 = scalar_lea.vmem %s823_s7, %s826_s27 }
   0xf   : > { %354 = vmatpush.msra.mxu0 %v295_v2  ;;  %v343_v4 = vld [vmem:[%s819_s3 + $0x1f8] sm:$0xff]  ;;  %v342_v8 = vld [vmem:[%s819_s3 + $0x1f0] sm:$0xff]  ;;  %v341_v11 = vld [vmem:[%s819_s3 + $0x1e8] sm:$0xff]  ;;  %s270_s22 = scalar_lea.vmem %s816_s0, %s515_s30 }
  0x10   : > { %v311_v6 = vld [vmem:[%s819_s3 + $0xf8] sm:$0xff]  ;;  %414 = vmatpush.msra.mxu3 %v343_v4  ;;  %395 = vmatpush.msra.mxu2 %v326_v3  ;;  %v310_v10 = vld [vmem:[%s819_s3 + $0xf0] sm:$0xff]  ;;  %v324_v12 = vld [vmem:[%s819_s3 + $0x160] sm:$0xff] }
  0x11   : > { %374 = vmatpush.msra.mxu1 %v311_v6  ;;  %355 = vmatpush.msra.mxu0 %v294_v5  ;;  %v292_v13 = vld [vmem:[%s819_s3 + $0x60] sm:$0xff]  ;;  %v309_v14 = vld [vmem:[%s819_s3 + $0xe8] sm:$0xff]  ;;  %v323_v17 = vld [vmem:[%s819_s3 + $0x158] sm:$0xff] }
  0x12   : > { %415 = vmatpush.msra.mxu3 %v342_v8  ;;  %396 = vmatpush.msra.mxu2 %v325_v7  ;;  %v340_v15 = vld [vmem:[%s819_s3 + $0x1e0] sm:$0xff]  ;;  %v291_v18 = vld [vmem:[%s819_s3 + $0x58] sm:$0xff]  ;;  %v322_v21 = vld [vmem:[%s819_s3 + $0x150] sm:$0xff] }
  0x13   : > { %375 = vmatpush.msra.mxu1 %v310_v10  ;;  %356 = vmatpush.msra.mxu0 %v293_v9  ;;  %v308_v16 = vld [vmem:[%s819_s3 + $0xe0] sm:$0xff]  ;;  %v339_v19 = vld [vmem:[%s819_s3 + $0x1d8] sm:$0xff]  ;;  %v290_v22 = vld [vmem:[%s819_s3 + $0x50] sm:$0xff] }
  0x14   : > { %416 = vmatpush.msra.mxu3 %v341_v11  ;;  %397 = vmatpush.msra.mxu2 %v324_v12  ;;  %v307_v20 = vld [vmem:[%s819_s3 + $0xd8] sm:$0xff]  ;;  %v338_v23 = vld [vmem:[%s819_s3 + $0x1d0] sm:$0xff]  ;;  %v321_v25 = vld [vmem:[%s819_s3 + $0x148] sm:$0xff] }
  0x15   : > { %376 = vmatpush.msra.mxu1 %v309_v14  ;;  %357 = vmatpush.msra.mxu0 %v292_v13  ;;  %v306_v24 = vld [vmem:[%s819_s3 + $0xd0] sm:$0xff]  ;;  %v289_v26 = vld [vmem:[%s819_s3 + $0x48] sm:$0xff]  ;;  %v320_v29 = vld [vmem:[%s819_s3 + $0x140] sm:$0xff] }
  0x16   : > { %417 = vmatpush.msra.mxu3 %v340_v15  ;;  %398 = vmatpush.msra.mxu2 %v323_v17  ;;  %v337_v27 = vld [vmem:[%s819_s3 + $0x1c8] sm:$0xff]  ;;  %v288_v30 = vld [vmem:[%s819_s3 + $0x40] sm:$0xff]  ;;  %v319_v33 = vld [vmem:[%s819_s3 + $0x138] sm:$0xff] }
  0x17   : > { %377 = vmatpush.msra.mxu1 %v308_v16  ;;  %358 = vmatpush.msra.mxu0 %v291_v18  ;;  %v305_v28 = vld [vmem:[%s819_s3 + $0xc8] sm:$0xff]  ;;  %v336_v31 = vld [vmem:[%s819_s3 + $0x1c0] sm:$0xff]  ;;  %v287_v34 = vld [vmem:[%s819_s3 + $0x38] sm:$0xff] }
  0x18   : > { %418 = vmatpush.msra.mxu3 %v339_v19  ;;  %399 = vmatpush.msra.mxu2 %v322_v21  ;;  %v304_v32 = vld [vmem:[%s819_s3 + $0xc0] sm:$0xff]  ;;  %v335_v35 = vld [vmem:[%s819_s3 + $0x1b8] sm:$0xff]  ;;  %v318_v37 = vld [vmem:[%s819_s3 + $0x130] sm:$0xff] }
  0x19   : > { %378 = vmatpush.msra.mxu1 %v307_v20  ;;  %359 = vmatpush.msra.mxu0 %v290_v22  ;;  %v303_v36 = vld [vmem:[%s819_s3 + $0xb8] sm:$0xff]  ;;  %v286_v38 = vld [vmem:[%s819_s3 + $0x30] sm:$0xff]  ;;  %v317_v41 = vld [vmem:[%s819_s3 + $0x128] sm:$0xff] }
  0x1a   : > { %419 = vmatpush.msra.mxu3 %v338_v23  ;;  %400 = vmatpush.msra.mxu2 %v321_v25  ;;  %v334_v39 = vld [vmem:[%s819_s3 + $0x1b0] sm:$0xff]  ;;  %v285_v42 = vld [vmem:[%s819_s3 + $0x28] sm:$0xff]  ;;  %v316_v43 = vld [vmem:[%s819_s3 + $0x120] sm:$0xff] }
  0x1b   : > { %379 = vmatpush.msra.mxu1 %v306_v24  ;;  %360 = vmatpush.msra.mxu0 %v289_v26  ;;  %v302_v40 = vld [vmem:[%s819_s3 + $0xb0] sm:$0xff]  ;;  %v333_v44 = vld [vmem:[%s819_s3 + $0x1a8] sm:$0xff]  ;;  %v284_v45 = vld [vmem:[%s819_s3 + $0x20] sm:$0xff] }
  0x1c   : > { %420 = vmatpush.msra.mxu3 %v337_v27  ;;  %401 = vmatpush.msra.mxu2 %v320_v29  ;;  %v301_v46 = vld [vmem:[%s819_s3 + $0xa8] sm:$0xff]  ;;  %v274_v47 = vld [vmem:[%s270_s22] sm:$0xf]  ;;  %v315_v53 = vld [vmem:[%s819_s3 + $0x118] sm:$0xff] }
  0x1d   : > { %380 = vmatpush.msra.mxu1 %v305_v28  ;;  %361 = vmatpush.msra.mxu0 %v288_v30  ;;  %v275_v48 = vld [vmem:[%s817_s1] sm:$0xf]  ;;  %v283_v54 = vld [vmem:[%s819_s3 + $0x18] sm:$0xff]  ;;  %v314_v58 = vld [vmem:[%s819_s3 + $0x110] sm:$0xff] }
  0x1e   : > { %421 = vmatpush.msra.mxu3 %v336_v31  ;;  %402 = vmatpush.msra.mxu2 %v319_v33  ;;  %v277_v49 = vld [vmem:[%s818_s2] sm:$0xf]  ;;  %v276_v52 = vmul.f32 %v275_v48, %v274_v47  ;;  %v331_v55 = vld [vmem:[%s819_s3 + $0x198] sm:$0xff]  ;;  %v282_v59 = vld [vmem:[%s819_s3 + $0x10] sm:$0xff] }
  0x1f   : > { %381 = vmatpush.msra.mxu1 %v304_v32  ;;  %362 = vmatpush.msra.mxu0 %v287_v34  ;;  %v332_v50 = vld [vmem:[%s819_s3 + $0x1a0] sm:$0xff]  ;;  %v299_v56 = vld [vmem:[%s819_s3 + $0x98] sm:$0xff]  ;;  %v330_v60 = vld [vmem:[%s819_s3 + $0x190] sm:$0xff] }
  0x20   : > { %422 = vmatpush.msra.mxu3 %v335_v35  ;;  %403 = vmatpush.msra.mxu2 %v318_v37  ;;  %v300_v51 = vld [vmem:[%s819_s3 + $0xa0] sm:$0xff]  ;;  %v278_v57 = vadd.f32 %v277_v49, %v276_v52  ;;  %v298_v61 = vld [vmem:[%s819_s3 + $0x90] sm:$0xff]  ;;  %v313_v63 = vld [vmem:[%s819_s3 + $0x108] sm:$0xff] }
  0x21   : > { %382 = vmatpush.msra.mxu1 %v303_v36  ;;  %363 = vmatpush.msra.mxu0 %v286_v38  ;;  %v281_v0 = vld [vmem:[%s819_s3 + $0x8] sm:$0xff]  ;;  %v312_v3 = vld [vmem:[%s819_s3 + $0x100] sm:$0xff] }
  0x22   : > { %423 = vmatpush.msra.mxu3 %v334_v39  ;;  %404 = vmatpush.msra.mxu2 %v317_v41  ;;  %v279_v62 = vmax.f32 %v278_v57, 0.0  ;;  %v329_v1 = vld [vmem:[%s819_s3 + $0x188] sm:$0xff]  ;;  %v280_v5 = vld [vmem:[%s819_s3] sm:$0xff] }
  0x23   : > { %383 = vmatpush.msra.mxu1 %v302_v40  ;;  %364 = vmatpush.msra.mxu0 %v285_v42  ;;  %v297_v2 = vld [vmem:[%s819_s3 + $0x88] sm:$0xff]  ;;  %v328_v6 = vld [vmem:[%s819_s3 + $0x180] sm:$0xff] }
  0x24   : > { %424 = vmatpush.msra.mxu3 %v333_v44  ;;  %405 = vmatpush.msra.mxu2 %v316_v43  ;;  %v348_v4 = vperm.slane %v279_v62, 2  ;;  %v346_v7 = vperm.slane %v279_v62, 0  ;;  %v349_v8 = vperm.slane %v279_v62, 3  ;;  %v296_v9 = vld [vmem:[%s819_s3 + $0x80] sm:$0xff]  ;;  %v347_v10 = vperm.slane %v279_v62, 1 }
  0x25   : > { %384 = vmatpush.msra.mxu1 %v301_v46  ;;  %365 = vmatpush.msra.mxu0 %v284_v45  ;;  %v344_v11 = vld [vmem:[%s820_s4] sm:$0x1] }
  0x26   : > { %425 = vmatpush.msra.mxu3 %v332_v50  ;;  %406 = vmatpush.msra.mxu2 %v315_v53  ;;  %v434_v19 = vld [vmem:[%s821_s5] sm:$0x1] }
  0x27   : > { %385 = vmatpush.msra.mxu1 %v300_v51  ;;  %366 = vmatpush.msra.mxu0 %v283_v54  ;;  %v440_v23 = vld [vmem:[#allocation2] sm:$0x1] }
  0x28   : > { %426 = vmatpush.msra.mxu3 %v331_v55  ;;  %407 = vmatpush.msra.mxu2 %v314_v58 }
  0x29   : > { %386 = vmatpush.msra.mxu1 %v299_v56  ;;  %367 = vmatpush.msra.mxu0 %v282_v59 }
  0x2a   : > { %427 = vmatpush.msra.mxu3 %v330_v60  ;;  %408 = vmatpush.msra.mxu2 %v313_v63 }
  0x2b   : > { %387 = vmatpush.msra.mxu1 %v298_v61  ;;  %368 = vmatpush.msra.mxu0 %v281_v0 }
  0x2c   : > { %428 = vmatpush.msra.mxu3 %v329_v1  ;;  %409 = vmatpush.msra.mxu2 %v312_v3 }
  0x2d   : > { %388 = vmatpush.msra.mxu1 %v297_v2  ;;  %369 = vmatpush.msra.mxu0 %v280_v5 }
  0x2e   : > { %410 = vmatmul.f32.vlgmr.msra.gmra.mxu2 %v348_v4  ;;  %429 = vmatpush.msra.mxu3 %v328_v6 }
  0x2f   : > { %370 = vmatmul.f32.vlgmr.msra.gmra.mxu0 %v346_v7  ;;  %430 = vmatmul.f32.vlgmr.msra.gmra.mxu3 %v349_v8 }
  0x30   : > { %389 = vmatpush.msra.mxu1 %v296_v9 }
  0x31   : > { %390 = vmatmul.f32.vlgmr.msra.gmra.mxu1 %v347_v10 }
  0xac   : > { %v371_v12 = vpop.f32.mrf.mxu0 }
  0xad   : > { %v372_v13 = vadd.f32 %v371_v12, %v344_v11 }
  0xae   : > { %v391_v14 = vpop.f32.mrf.mxu1 }
  0xaf   : > { %v392_v15 = vadd.f32 %v391_v14, %v372_v13 }
  0xb1   : > { %v411_v16 = vpop.f32.mrf.mxu2 }
  0xb2   : > { %v412_v17 = vadd.f32 %v411_v16, %v392_v15  ;;  %v431_v18 = vpop.f32.mrf.mxu3 }
  0xb4   : > { %v432_v20 = vadd.f32 %v431_v18, %v412_v17 }
  0xb6   : > { %v435_v21 = vmul.f32 %v434_v19, %v432_v20 }
  0xb8   : > { %v437_v22 = vsel %vm436_vm0, %v435_v21, 0.0 }
  0xb9   : > { %438 = vadd.xlane.f32.xlu0 %v437_v22 }
 0x12c   : > { %v439_v24 = vpop.xlane.xlu0 %438 }
 0x12d   : > { %v441_v25 = vadd.f32 %v440_v23, %v439_v24 }
 0x12f   : > { %v442_v26 = vsub.f32 0.0, %v441_v25 }
 0x131   : > { %v443_v27 = vmul.f32 1.442695, %v442_v26 }
 0x133   : > { %526 = vpow2.f32 %v443_v27 }
 0x139   : > { %v527_v28 = vpop.eup %526 }
 0x13a   : > { %v445_v29 = vadd.f32 1.0, %v527_v28 }
 0x13c   : > { %528 = vrcp.f32 %v445_v29  ;;  %v457_v33 = vand.u32 2147483648, %v445_v29  ;;  %v455_v35 = vand.u32 2147483647, %v445_v29  ;;  %vm451_vm2 = vweird.f32 %v445_v29 }
 0x13e   : > { %v458_v37 = vor.u32 1.1754944e-38, %v457_v33  ;;  %vm456_vm5 = vcmp.eq.f32.partialorder %v455_v35, 8.507059e+37 }
 0x142   : > { %v529_v30 = vpop.eup %528 }
 0x143   : > { %v447_v31 = vmul.f32 %v529_v30, %v445_v29  ;;  %vm452_vm1 = vweird.f32 %v529_v30 }
 0x144   : > { %vm453_vm3 = vmor %vm451_vm2, %vm452_vm1 }
 0x145   : > { %v448_v32 = vsub.f32 1.0, %v447_v31 }
 0x147   : > { %v449_v34 = vmul.f32 %v529_v30, %v448_v32 }
 0x149   : > { %v450_v36 = vadd.f32 %v529_v30, %v449_v34 }
 0x14b   : > { %v454_v38 = vsel %vm453_vm3, %v529_v30, %v450_v36 }
 0x14c   : > { %v459_v39 = vsel %vm456_vm5, %v458_v37, %v454_v38 }
 0x14d   : > { %462 = vst.msk [vmem:[%s273_s15] sm:$0x1] %vm461_vm4, %v459_v39 }
 0x14e PF: > { %s19_s26 = sadd.s32 1, %s536_s26  }
 0x14f   : > { %p16_p4 = scmp.ge.s32.totalorder %s19_s26, 4  }
 0x151   :  { %18 = sbr.rel (!%p16_p4) target bundleno = 3 (0x3), region = 78 }

</bundles_post_ra>
